<compile_context>
chip_gen: v5e
topology: v5e:2x2
jax: 0.10.0
libtpu: 0.0.40
codegen_flags: <defaults>
</compile_context>

<pallas_src>
import jax
import jax.numpy as jnp
from jax import lax
from jax.experimental import pallas as pl
from jax.experimental.pallas import tpu as pltpu

# ---------------- scaled-down ViT config (vit_base is 768/12/12/1000) --------
BATCH = 2
IN_CHANS = 3
IMG = 32
PATCH = 16
EMBED_DIM = 32
DEPTH = 2
NUM_HEADS = 4
MLP_RATIO = 4
NUM_CLASSES = 5
LN_EPS = 1e-6  # timm ViT LayerNorm eps

HEAD_DIM = EMBED_DIM // NUM_HEADS
MLP_DIM = MLP_RATIO * EMBED_DIM
GRID_HW = IMG // PATCH
N_PATCH = GRID_HW * GRID_HW
SEQ = N_PATCH + 1                 # tokens per image (cls + patches) = 5
TOKENS = BATCH * SEQ              # valid token rows = 10
TOK_PAD = 16                      # token rows padded to a multiple of 8 sublanes
STACKED = NUM_HEADS * TOK_PAD     # head-stacked attention rows = 64
HEAD_PAD = 128                    # classifier output padded to one full lane width
PATCH_DIM = IN_CHANS * PATCH * PATCH
NEG_INF = -1e30
_INV_SQRT2 = 0.7071067811865476


# ------------------------------- fused kernel --------------------------------
def _vit_kernel(patches_ref, tokbias_ref, attnbias_ref, patch_w_ref,
                qkv_w_ref, proj_w_ref, fc1_w_ref, fc2_w_ref, bias_ref,
                head_w_ref, head_b_ref, out_ref):
    """Whole ViT forward on a (TOK_PAD, D) token tile resident in VMEM."""
    D, NH, HD = EMBED_DIM, NUM_HEADS, HEAD_DIM

    def layernorm(x):                      # affine folded into the next matmul
        mean = jnp.mean(x, axis=-1, keepdims=True)
        var = jnp.mean(jnp.square(x - mean), axis=-1, keepdims=True)
        return (x - mean) * lax.rsqrt(var + LN_EPS)

    def gelu(x):                           # exact (erf) GELU == torch.nn.GELU()
        return 0.5 * x * (1.0 + lax.erf(x * _INV_SQRT2))

    def stack_heads(a):                    # (TOK_PAD, D) -> (NH*TOK_PAD, HD), head-major rows
        return jnp.concatenate([a[:, h * HD:(h + 1) * HD] for h in range(NH)], axis=0)

    attn_bias = attnbias_ref[...]          # (64, 64): 0 inside (batch, head) blocks else -1e30

    # patch-embed matmul; tok_bias folds pos-embed + patch_b + cls-token
    x = (jnp.dot(patches_ref[...], patch_w_ref[...],
                 preferred_element_type=jnp.float32) + tokbias_ref[...])   # (16, 32)

    for d in range(DEPTH):
        bias_slab = bias_ref[d]                         # (4, 128) packed biases
        qkv_b = bias_slab[0:1, :3 * D]
        proj_b = bias_slab[1:2, :D]
        fc1_b = bias_slab[2:3, :MLP_DIM]
        fc2_b = bias_slab[3:4, :D]

        # ---- attention: LN affine + softmax scale pre-folded into qkv_w/qkv_b ----
        h = layernorm(x)
        qkv = jnp.dot(h, qkv_w_ref[d], preferred_element_type=jnp.float32) + qkv_b
        q = stack_heads(qkv[:, :D])                     # (64, 8)
        k = stack_heads(qkv[:, D:2 * D])                # (64, 8)
        v = stack_heads(qkv[:, 2 * D:])                 # (64, 8)
        s = lax.dot_general(q, k, (((1,), (1,)), ((), ())),
                            preferred_element_type=jnp.float32) + attn_bias  # (64, 64)
        m = jnp.max(s, axis=-1, keepdims=True)
        p = jnp.exp(s - m)
        p = p * pl.reciprocal(jnp.sum(p, axis=-1, keepdims=True), approx=True)
        o = jnp.dot(p, v, preferred_element_type=jnp.float32)                # (64, 8)
        # merge heads back to (TOK_PAD, D) in head-concat channel order
        o = jnp.concatenate([o[hh * TOK_PAD:(hh + 1) * TOK_PAD, :] for hh in range(NH)],
                            axis=1)                                          # (16, 32)
        x = x + jnp.dot(o, proj_w_ref[d], preferred_element_type=jnp.float32) + proj_b

        # ---- MLP: LN affine pre-folded into fc1_w/fc1_b ----
        h = layernorm(x)
        h = jnp.dot(h, fc1_w_ref[d], preferred_element_type=jnp.float32) + fc1_b
        h = gelu(h)
        h = jnp.dot(h, fc2_w_ref[d], preferred_element_type=jnp.float32) + fc2_b
        x = x + h

    # ---- final LN (affine folded into head) + classifier, lane-dense output ----
    x = layernorm(x)
    out_ref[...] = (jnp.dot(x, head_w_ref[...], preferred_element_type=jnp.float32)
                    + head_b_ref[...]).astype(out_ref.dtype)


# ------------------------------- parameter init ------------------------------
def init_params(key):
    D = EMBED_DIM
    H = MLP_DIM
    keys = iter(jax.random.split(key, 8 + DEPTH * 6))

    def w(k, shape, scale=0.02):
        return (scale * jax.random.normal(k, shape)).astype(jnp.float32)

    params = {
        # conv patch-embed (D, C, P, P) flattened to (C*P*P, D) matmul weight
        "patch_w": w(next(keys), (PATCH_DIM, D)),
        "patch_b": jnp.zeros((D,), jnp.float32),
        "cls_token": w(next(keys), (1, 1, D)),
        "pos_embed": w(next(keys), (1, SEQ, D)),
        "ln_g": jnp.ones((D,), jnp.float32),
        "ln_b": jnp.zeros((D,), jnp.float32),
        "head_w": w(next(keys), (D, NUM_CLASSES)),
        "head_b": jnp.zeros((NUM_CLASSES,), jnp.float32),
        "blocks": [],
    }
    for _ in range(DEPTH):
        blk = {
            "ln1_g": jnp.ones((D,), jnp.float32),
            "ln1_b": jnp.zeros((D,), jnp.float32),
            "qkv_w": w(next(keys), (D, 3 * D)),
            "qkv_b": jnp.zeros((3 * D,), jnp.float32),
            "proj_w": w(next(keys), (D, D)),
            "proj_b": jnp.zeros((D,), jnp.float32),
            "ln2_g": jnp.ones((D,), jnp.float32),
            "ln2_b": jnp.zeros((D,), jnp.float32),
            "fc1_w": w(next(keys), (D, H)),
            "fc1_b": jnp.zeros((H,), jnp.float32),
            "fc2_w": w(next(keys), (H, D)),
            "fc2_b": jnp.zeros((D,), jnp.float32),
        }
        params["blocks"].append(blk)
    return params


# ------------------------------- forward pass --------------------------------
def vit_forward(params, image):
    B, C, Himg, Wimg = image.shape
    P, D = PATCH, EMBED_DIM
    gh, gw = Himg // P, Wimg // P
    n = gh * gw
    S = n + 1
    f32 = jnp.float32
    scale = float(HEAD_DIM) ** -0.5

    # patch extraction; (c, ph, pw) flatten order matches Conv2d(kernel=stride=P)
    patches = image.reshape(B, C, gh, P, gw, P).transpose(0, 2, 4, 1, 3, 5)
    patches = patches.reshape(B, n, C * P * P)
    # a zero "patch" at sequence position 0 of each image reserves the cls slot
    patches = jnp.concatenate([jnp.zeros((B, 1, C * P * P), f32), patches], axis=1)
    patches = patches.reshape(B * S, C * P * P)
    patches = jnp.pad(patches, ((0, TOK_PAD - B * S), (0, 0)))           # (16, 768)

    # per-token additive bias: pos-embed + patch_b (patch rows) / cls_token (cls rows)
    row = jnp.arange(TOK_PAD)
    seqpos = row % S
    valid = row < B * S
    is_cls = (seqpos == 0) & valid
    pos_full = params["pos_embed"][0][seqpos]                            # (16, D)
    base = jnp.where(is_cls[:, None], params["cls_token"][0, 0][None, :],
                     params["patch_b"][None, :])
    tok_bias = jnp.where(valid[:, None], pos_full + base, 0.0).astype(f32)

    # stacked (batch, head) block-diagonal attention bias (head-major rows).
    # pad token rows get their own batch ids so they stay isolated from valid tokens.
    r = jnp.arange(STACKED)
    head_id = r // TOK_PAD
    tok_id = r % TOK_PAD
    bid = tok_id // S
    same = (head_id[:, None] == head_id[None, :]) & (bid[:, None] == bid[None, :])
    attn_bias = jnp.where(same, 0.0, NEG_INF).astype(f32)                # (64, 64)

    def fold_ln(g, b, w, bias):            # LayerNorm affine folded into next matmul
        return g[:, None] * w, bias + b @ w

    qkv_w_l, proj_w_l, fc1_w_l, fc2_w_l, bias_l = [], [], [], [], []
    for blk in params["blocks"]:
        qkv_w, qkv_b = fold_ln(blk["ln1_g"], blk["ln1_b"], blk["qkv_w"], blk["qkv_b"])
        qkv_w = qkv_w.at[:, :D].multiply(scale)          # attention scale folded into Q
        qkv_b = qkv_b.at[:D].multiply(scale)
        fc1_w, fc1_b = fold_ln(blk["ln2_g"], blk["ln2_b"], blk["fc1_w"], blk["fc1_b"])
        qkv_w_l.append(qkv_w)
        proj_w_l.append(blk["proj_w"])
        fc1_w_l.append(fc1_w)
        fc2_w_l.append(blk["fc2_w"])
        bias_l.append(jnp.zeros((4, HEAD_PAD), f32)
                      .at[0, :3 * D].set(qkv_b)
                      .at[1, :D].set(blk["proj_b"])
                      .at[2, :MLP_DIM].set(fc1_b)
                      .at[3, :D].set(blk["fc2_b"]))
    qkv_w_all = jnp.stack(qkv_w_l)         # (DEPTH, 32, 96)
    proj_w_all = jnp.stack(proj_w_l)       # (DEPTH, 32, 32)
    fc1_w_all = jnp.stack(fc1_w_l)         # (DEPTH, 32, 128)
    fc2_w_all = jnp.stack(fc2_w_l)         # (DEPTH, 128, 32)
    bias_all = jnp.stack(bias_l)           # (DEPTH, 4, 128)

    # final LN folded into the (lane-padded) classifier head
    hw, hb = fold_ln(params["ln_g"], params["ln_b"], params["head_w"], params["head_b"])
    head_w = jnp.zeros((D, HEAD_PAD), f32).at[:, :NUM_CLASSES].set(hw)
    head_b = jnp.zeros((1, HEAD_PAD), f32).at[0, :NUM_CLASSES].set(hb)

    inputs = [patches, tok_bias, attn_bias, params["patch_w"],
              qkv_w_all, proj_w_all, fc1_w_all, fc2_w_all, bias_all,
              head_w, head_b]

    # gridless call: every operand whole-array resident in VMEM, no pipeline machinery
    vmem = pl.BlockSpec(memory_space=pltpu.MemorySpace.VMEM)
    logits_full = pl.pallas_call(
        _vit_kernel,
        out_shape=jax.ShapeDtypeStruct((TOK_PAD, HEAD_PAD), f32),
        in_specs=[vmem] * len(inputs),
        out_specs=vmem,
    )(*inputs)

    # cls-token rows are 0, S, 2S, ...; drop the row / lane padding
    logits = logits_full[:B * S].reshape(B, S, HEAD_PAD)[:, 0, :NUM_CLASSES]
    return logits


# --------------------------- pure-JAX reference ------------------------------
def vit_forward_ref(params, image):
    B, C, Himg, Wimg = image.shape
    P, D, NH = PATCH, EMBED_DIM, NUM_HEADS
    Dh = D // NH
    gh, gw = Himg // P, Wimg // P
    n = gh * gw
    patches = image.reshape(B, C, gh, P, gw, P).transpose(0, 2, 4, 1, 3, 5)
    patches = patches.reshape(B * n, C * P * P)
    x = (patches @ params["patch_w"] + params["patch_b"]).reshape(B, n, D)
    cls = jnp.broadcast_to(params["cls_token"], (B, 1, D))
    x = jnp.concatenate([cls, x], axis=1) + params["pos_embed"]
    S = n + 1
    scale = float(Dh) ** -0.5

    def ln(v, g, b):
        mu = v.mean(-1, keepdims=True)
        var = ((v - mu) ** 2).mean(-1, keepdims=True)
        return (v - mu) * lax.rsqrt(var + LN_EPS) * g + b

    for blk in params["blocks"]:
        h = ln(x, blk["ln1_g"], blk["ln1_b"])
        qkv = h @ blk["qkv_w"] + blk["qkv_b"]
        qkv = qkv.reshape(B, S, 3, NH, Dh).transpose(2, 0, 3, 1, 4)
        q, k, v = qkv[0], qkv[1], qkv[2]
        s = jnp.einsum("bhqd,bhkd->bhqk", q, k) * scale
        p = jax.nn.softmax(s, axis=-1)
        o = jnp.einsum("bhqk,bhkd->bhqd", p, v).transpose(0, 2, 1, 3).reshape(B, S, D)
        x = x + (o @ blk["proj_w"] + blk["proj_b"])
        h = ln(x, blk["ln2_g"], blk["ln2_b"])
        h = h @ blk["fc1_w"] + blk["fc1_b"]
        h = 0.5 * h * (1.0 + lax.erf(h * _INV_SQRT2))
        x = x + (h @ blk["fc2_w"] + blk["fc2_b"])

    x = ln(x, params["ln_g"], params["ln_b"])
    return x[:, 0, :] @ params["head_w"] + params["head_b"]


# ----------------------------------- main -------------------------------------
if __name__ == "__main__":
    root = jax.random.PRNGKey(0)
    k_img, k_params = jax.random.split(root)
    image = jax.random.normal(k_img, (BATCH, IN_CHANS, IMG, IMG), dtype=jnp.float32)
    params = init_params(k_params)

    logits = jax.jit(vit_forward)(params, image)
    logits = jax.block_until_ready(logits)
    assert logits.shape == (BATCH, NUM_CLASSES), logits.shape
    assert bool(jnp.all(jnp.isfinite(logits)))

    ref = vit_forward_ref(params, image)
    assert bool(jnp.allclose(logits, ref, rtol=5e-2, atol=5e-3)), (logits, ref)

    print("KERNEL_OK")
</pallas_src>

<mosaic_0001>
module attributes {stable_mosaic.version = 11 : i64} {
  func.func @_vit_kernel(%arg0: memref<16x768xf32, #tpu.memory_space<vmem>>, %arg1: memref<16x32xf32, #tpu.memory_space<vmem>>, %arg2: memref<64x64xf32, #tpu.memory_space<vmem>>, %arg3: memref<768x32xf32, #tpu.memory_space<vmem>>, %arg4: memref<2x32x96xf32, #tpu.memory_space<vmem>>, %arg5: memref<2x32x32xf32, #tpu.memory_space<vmem>>, %arg6: memref<2x32x128xf32, #tpu.memory_space<vmem>>, %arg7: memref<2x128x32xf32, #tpu.memory_space<vmem>>, %arg8: memref<2x4x128xf32, #tpu.memory_space<vmem>>, %arg9: memref<32x128xf32, #tpu.memory_space<vmem>>, %arg10: memref<1x128xf32, #tpu.memory_space<vmem>>, %arg11: memref<16x128xf32, #tpu.memory_space<vmem>>) attributes {dimension_semantics = [], scalar_prefetch = 0 : i64, scratch_operands = 0 : i64, tpu.core_type = #tpu.core_type<tc>} {
    %c0 = arith.constant 0 : index
    %c0_0 = arith.constant 0 : index
    %0 = vector.load %arg2[%c0, %c0_0] : memref<64x64xf32, #tpu.memory_space<vmem>>, vector<64x64xf32>
    %c0_1 = arith.constant 0 : index
    %c0_2 = arith.constant 0 : index
    %1 = vector.load %arg0[%c0_1, %c0_2] : memref<16x768xf32, #tpu.memory_space<vmem>>, vector<16x768xf32>
    %c0_3 = arith.constant 0 : index
    %c0_4 = arith.constant 0 : index
    %2 = vector.load %arg3[%c0_3, %c0_4] : memref<768x32xf32, #tpu.memory_space<vmem>>, vector<768x32xf32>
    %cst = arith.constant dense<0.000000e+00> : vector<16x32xf32>
    %3 = tpu.matmul %1, %2, %cst {dimension_numbers = #tpu.dot_dimension_numbers<[1], [0], [0], [1], [0, 0, 1, 1], [], []>} : vector<16x768xf32>, vector<768x32xf32>, vector<16x32xf32> -> vector<16x32xf32>
    %c0_5 = arith.constant 0 : index
    %c0_6 = arith.constant 0 : index
    %4 = vector.load %arg1[%c0_5, %c0_6] : memref<16x32xf32, #tpu.memory_space<vmem>>, vector<16x32xf32>
    %5 = arith.addf %3, %4 : vector<16x32xf32>
    %c0_7 = arith.constant 0 : index
    %c0_8 = arith.constant 0 : index
    %c0_9 = arith.constant 0 : index
    %6 = vector.load %arg8[%c0_7, %c0_8, %c0_9] : memref<2x4x128xf32, #tpu.memory_space<vmem>>, vector<1x4x128xf32>
    %7 = vector.shape_cast %6 : vector<1x4x128xf32> to vector<4x128xf32>
    %8 = vector.extract_strided_slice %7 {offsets = [0, 0], sizes = [1, 96], strides = [1, 1]} : vector<4x128xf32> to vector<1x96xf32>
    %9 = vector.extract_strided_slice %7 {offsets = [1, 0], sizes = [1, 32], strides = [1, 1]} : vector<4x128xf32> to vector<1x32xf32>
    %10 = vector.extract_strided_slice %7 {offsets = [2, 0], sizes = [1, 128], strides = [1, 1]} : vector<4x128xf32> to vector<1x128xf32>
    %11 = vector.extract_strided_slice %7 {offsets = [3, 0], sizes = [1, 32], strides = [1, 1]} : vector<4x128xf32> to vector<1x32xf32>
    %cst_10 = arith.constant dense<0.000000e+00> : vector<16xf32>
    %12 = vector.multi_reduction <add>, %5, %cst_10 [1] : vector<16x32xf32> to vector<16xf32>
    %13 = vector.shape_cast %12 : vector<16xf32> to vector<16x1xf32>
    %cst_11 = arith.constant 3.200000e+01 : f32
    %14 = vector.broadcast %cst_11 : f32 to vector<16x1xf32>
    %15 = arith.divf %13, %14 : vector<16x1xf32>
    %16 = vector.broadcast %15 : vector<16x1xf32> to vector<16x32xf32>
    %17 = arith.subf %5, %16 : vector<16x32xf32>
    %18 = arith.mulf %17, %17 : vector<16x32xf32>
    %cst_12 = arith.constant dense<0.000000e+00> : vector<16xf32>
    %19 = vector.multi_reduction <add>, %18, %cst_12 [1] : vector<16x32xf32> to vector<16xf32>
    %20 = vector.shape_cast %19 : vector<16xf32> to vector<16x1xf32>
    %cst_13 = arith.constant 3.200000e+01 : f32
    %21 = vector.broadcast %cst_13 : f32 to vector<16x1xf32>
    %22 = arith.divf %20, %21 : vector<16x1xf32>
    %23 = vector.broadcast %15 : vector<16x1xf32> to vector<16x32xf32>
    %24 = arith.subf %5, %23 : vector<16x32xf32>
    %cst_14 = arith.constant 9.99999997E-7 : f32
    %25 = vector.broadcast %cst_14 : f32 to vector<16x1xf32>
    %26 = arith.addf %22, %25 : vector<16x1xf32>
    %27 = math.rsqrt %26 : vector<16x1xf32>
    %28 = vector.broadcast %27 : vector<16x1xf32> to vector<16x32xf32>
    %29 = arith.mulf %24, %28 : vector<16x32xf32>
    %c0_15 = arith.constant 0 : index
    %c0_16 = arith.constant 0 : index
    %c0_17 = arith.constant 0 : index
    %30 = vector.load %arg4[%c0_15, %c0_16, %c0_17] : memref<2x32x96xf32, #tpu.memory_space<vmem>>, vector<1x32x96xf32>
    %31 = vector.shape_cast %30 : vector<1x32x96xf32> to vector<32x96xf32>
    %cst_18 = arith.constant dense<0.000000e+00> : vector<16x96xf32>
    %32 = tpu.matmul %29, %31, %cst_18 {dimension_numbers = #tpu.dot_dimension_numbers<[1], [0], [0], [1], [0, 0, 1, 1], [], []>} : vector<16x32xf32>, vector<32x96xf32>, vector<16x96xf32> -> vector<16x96xf32>
    %33 = vector.broadcast %8 : vector<1x96xf32> to vector<16x96xf32>
    %34 = arith.addf %32, %33 : vector<16x96xf32>
    %35 = vector.extract_strided_slice %34 {offsets = [0, 0], sizes = [16, 32], strides = [1, 1]} : vector<16x96xf32> to vector<16x32xf32>
    %36 = vector.extract_strided_slice %35 {offsets = [0, 0], sizes = [16, 8], strides = [1, 1]} : vector<16x32xf32> to vector<16x8xf32>
    %37 = vector.extract_strided_slice %35 {offsets = [0, 8], sizes = [16, 8], strides = [1, 1]} : vector<16x32xf32> to vector<16x8xf32>
    %38 = vector.extract_strided_slice %35 {offsets = [0, 16], sizes = [16, 8], strides = [1, 1]} : vector<16x32xf32> to vector<16x8xf32>
    %39 = vector.extract_strided_slice %35 {offsets = [0, 24], sizes = [16, 8], strides = [1, 1]} : vector<16x32xf32> to vector<16x8xf32>
    %40 = tpu.concatenate %36, %37, %38, %39 in 0 : vector<16x8xf32>, vector<16x8xf32>, vector<16x8xf32>, vector<16x8xf32> -> vector<64x8xf32>
    %41 = vector.extract_strided_slice %34 {offsets = [0, 32], sizes = [16, 32], strides = [1, 1]} : vector<16x96xf32> to vector<16x32xf32>
    %42 = vector.extract_strided_slice %41 {offsets = [0, 0], sizes = [16, 8], strides = [1, 1]} : vector<16x32xf32> to vector<16x8xf32>
    %43 = vector.extract_strided_slice %41 {offsets = [0, 8], sizes = [16, 8], strides = [1, 1]} : vector<16x32xf32> to vector<16x8xf32>
    %44 = vector.extract_strided_slice %41 {offsets = [0, 16], sizes = [16, 8], strides = [1, 1]} : vector<16x32xf32> to vector<16x8xf32>
    %45 = vector.extract_strided_slice %41 {offsets = [0, 24], sizes = [16, 8], strides = [1, 1]} : vector<16x32xf32> to vector<16x8xf32>
    %46 = tpu.concatenate %42, %43, %44, %45 in 0 : vector<16x8xf32>, vector<16x8xf32>, vector<16x8xf32>, vector<16x8xf32> -> vector<64x8xf32>
    %47 = vector.extract_strided_slice %34 {offsets = [0, 64], sizes = [16, 32], strides = [1, 1]} : vector<16x96xf32> to vector<16x32xf32>
    %48 = vector.extract_strided_slice %47 {offsets = [0, 0], sizes = [16, 8], strides = [1, 1]} : vector<16x32xf32> to vector<16x8xf32>
    %49 = vector.extract_strided_slice %47 {offsets = [0, 8], sizes = [16, 8], strides = [1, 1]} : vector<16x32xf32> to vector<16x8xf32>
    %50 = vector.extract_strided_slice %47 {offsets = [0, 16], sizes = [16, 8], strides = [1, 1]} : vector<16x32xf32> to vector<16x8xf32>
    %51 = vector.extract_strided_slice %47 {offsets = [0, 24], sizes = [16, 8], strides = [1, 1]} : vector<16x32xf32> to vector<16x8xf32>
    %52 = tpu.concatenate %48, %49, %50, %51 in 0 : vector<16x8xf32>, vector<16x8xf32>, vector<16x8xf32>, vector<16x8xf32> -> vector<64x8xf32>
    %cst_19 = arith.constant dense<0.000000e+00> : vector<64x64xf32>
    %53 = tpu.matmul %40, %46, %cst_19 {dimension_numbers = #tpu.dot_dimension_numbers<[1], [1], [0], [0], [0, 0, 1, 0], [], []>} : vector<64x8xf32>, vector<64x8xf32>, vector<64x64xf32> -> vector<64x64xf32>
    %54 = arith.addf %53, %0 : vector<64x64xf32>
    %cst_20 = arith.constant dense<0xFF800000> : vector<64xf32>
    %55 = vector.multi_reduction <maximumf>, %54, %cst_20 [1] : vector<64x64xf32> to vector<64xf32>
    %56 = vector.shape_cast %55 : vector<64xf32> to vector<64x1xf32>
    %57 = vector.broadcast %56 : vector<64x1xf32> to vector<64x64xf32>
    %58 = arith.subf %54, %57 : vector<64x64xf32>
    %59 = math.exp %58 : vector<64x64xf32>
    %cst_21 = arith.constant dense<0.000000e+00> : vector<64xf32>
    %60 = vector.multi_reduction <add>, %59, %cst_21 [1] : vector<64x64xf32> to vector<64xf32>
    %61 = vector.shape_cast %60 : vector<64xf32> to vector<64x1xf32>
    %62 = tpu.reciprocal %61 {approx = true} : vector<64x1xf32> -> vector<64x1xf32>
    %63 = vector.broadcast %62 : vector<64x1xf32> to vector<64x64xf32>
    %64 = arith.mulf %59, %63 : vector<64x64xf32>
    %cst_22 = arith.constant dense<0.000000e+00> : vector<64x8xf32>
    %65 = tpu.matmul %64, %52, %cst_22 {dimension_numbers = #tpu.dot_dimension_numbers<[1], [0], [0], [1], [0, 0, 1, 1], [], []>} : vector<64x64xf32>, vector<64x8xf32>, vector<64x8xf32> -> vector<64x8xf32>
    %66 = vector.extract_strided_slice %65 {offsets = [0, 0], sizes = [16, 8], strides = [1, 1]} : vector<64x8xf32> to vector<16x8xf32>
    %67 = vector.extract_strided_slice %65 {offsets = [16, 0], sizes = [16, 8], strides = [1, 1]} : vector<64x8xf32> to vector<16x8xf32>
    %68 = vector.extract_strided_slice %65 {offsets = [32, 0], sizes = [16, 8], strides = [1, 1]} : vector<64x8xf32> to vector<16x8xf32>
    %69 = vector.extract_strided_slice %65 {offsets = [48, 0], sizes = [16, 8], strides = [1, 1]} : vector<64x8xf32> to vector<16x8xf32>
    %70 = tpu.concatenate %66, %67, %68, %69 in 1 : vector<16x8xf32>, vector<16x8xf32>, vector<16x8xf32>, vector<16x8xf32> -> vector<16x32xf32>
    %c0_23 = arith.constant 0 : index
    %c0_24 = arith.constant 0 : index
    %c0_25 = arith.constant 0 : index
    %71 = vector.load %arg5[%c0_23, %c0_24, %c0_25] : memref<2x32x32xf32, #tpu.memory_space<vmem>>, vector<1x32x32xf32>
    %72 = vector.shape_cast %71 : vector<1x32x32xf32> to vector<32x32xf32>
    %cst_26 = arith.constant dense<0.000000e+00> : vector<16x32xf32>
    %73 = tpu.matmul %70, %72, %cst_26 {dimension_numbers = #tpu.dot_dimension_numbers<[1], [0], [0], [1], [0, 0, 1, 1], [], []>} : vector<16x32xf32>, vector<32x32xf32>, vector<16x32xf32> -> vector<16x32xf32>
    %74 = arith.addf %5, %73 : vector<16x32xf32>
    %75 = vector.broadcast %9 : vector<1x32xf32> to vector<16x32xf32>
    %76 = arith.addf %74, %75 : vector<16x32xf32>
    %cst_27 = arith.constant dense<0.000000e+00> : vector<16xf32>
    %77 = vector.multi_reduction <add>, %76, %cst_27 [1] : vector<16x32xf32> to vector<16xf32>
    %78 = vector.shape_cast %77 : vector<16xf32> to vector<16x1xf32>
    %cst_28 = arith.constant 3.200000e+01 : f32
    %79 = vector.broadcast %cst_28 : f32 to vector<16x1xf32>
    %80 = arith.divf %78, %79 : vector<16x1xf32>
    %81 = vector.broadcast %80 : vector<16x1xf32> to vector<16x32xf32>
    %82 = arith.subf %76, %81 : vector<16x32xf32>
    %83 = arith.mulf %82, %82 : vector<16x32xf32>
    %cst_29 = arith.constant dense<0.000000e+00> : vector<16xf32>
    %84 = vector.multi_reduction <add>, %83, %cst_29 [1] : vector<16x32xf32> to vector<16xf32>
    %85 = vector.shape_cast %84 : vector<16xf32> to vector<16x1xf32>
    %cst_30 = arith.constant 3.200000e+01 : f32
    %86 = vector.broadcast %cst_30 : f32 to vector<16x1xf32>
    %87 = arith.divf %85, %86 : vector<16x1xf32>
    %88 = vector.broadcast %80 : vector<16x1xf32> to vector<16x32xf32>
    %89 = arith.subf %76, %88 : vector<16x32xf32>
    %cst_31 = arith.constant 9.99999997E-7 : f32
    %90 = vector.broadcast %cst_31 : f32 to vector<16x1xf32>
    %91 = arith.addf %87, %90 : vector<16x1xf32>
    %92 = math.rsqrt %91 : vector<16x1xf32>
    %93 = vector.broadcast %92 : vector<16x1xf32> to vector<16x32xf32>
    %94 = arith.mulf %89, %93 : vector<16x32xf32>
    %c0_32 = arith.constant 0 : index
    %c0_33 = arith.constant 0 : index
    %c0_34 = arith.constant 0 : index
    %95 = vector.load %arg6[%c0_32, %c0_33, %c0_34] : memref<2x32x128xf32, #tpu.memory_space<vmem>>, vector<1x32x128xf32>
    %96 = vector.shape_cast %95 : vector<1x32x128xf32> to vector<32x128xf32>
    %cst_35 = arith.constant dense<0.000000e+00> : vector<16x128xf32>
    %97 = tpu.matmul %94, %96, %cst_35 {dimension_numbers = #tpu.dot_dimension_numbers<[1], [0], [0], [1], [0, 0, 1, 1], [], []>} : vector<16x32xf32>, vector<32x128xf32>, vector<16x128xf32> -> vector<16x128xf32>
    %98 = vector.broadcast %10 : vector<1x128xf32> to vector<16x128xf32>
    %99 = arith.addf %97, %98 : vector<16x128xf32>
    %cst_36 = arith.constant 5.000000e-01 : f32
    %100 = vector.broadcast %cst_36 : f32 to vector<16x128xf32>
    %101 = arith.mulf %100, %99 : vector<16x128xf32>
    %cst_37 = arith.constant 0.707106769 : f32
    %102 = vector.broadcast %cst_37 : f32 to vector<16x128xf32>
    %103 = arith.mulf %99, %102 : vector<16x128xf32>
    %104 = math.erf %103 : vector<16x128xf32>
    %cst_38 = arith.constant 1.000000e+00 : f32
    %105 = vector.broadcast %cst_38 : f32 to vector<16x128xf32>
    %106 = arith.addf %105, %104 : vector<16x128xf32>
    %107 = arith.mulf %101, %106 : vector<16x128xf32>
    %c0_39 = arith.constant 0 : index
    %c0_40 = arith.constant 0 : index
    %c0_41 = arith.constant 0 : index
    %108 = vector.load %arg7[%c0_39, %c0_40, %c0_41] : memref<2x128x32xf32, #tpu.memory_space<vmem>>, vector<1x128x32xf32>
    %109 = vector.shape_cast %108 : vector<1x128x32xf32> to vector<128x32xf32>
    %cst_42 = arith.constant dense<0.000000e+00> : vector<16x32xf32>
    %110 = tpu.matmul %107, %109, %cst_42 {dimension_numbers = #tpu.dot_dimension_numbers<[1], [0], [0], [1], [0, 0, 1, 1], [], []>} : vector<16x128xf32>, vector<128x32xf32>, vector<16x32xf32> -> vector<16x32xf32>
    %111 = vector.broadcast %11 : vector<1x32xf32> to vector<16x32xf32>
    %112 = arith.addf %110, %111 : vector<16x32xf32>
    %113 = arith.addf %76, %112 : vector<16x32xf32>
    %c1 = arith.constant 1 : index
    %c0_43 = arith.constant 0 : index
    %c0_44 = arith.constant 0 : index
    %114 = vector.load %arg8[%c1, %c0_43, %c0_44] : memref<2x4x128xf32, #tpu.memory_space<vmem>>, vector<1x4x128xf32>
    %115 = vector.shape_cast %114 : vector<1x4x128xf32> to vector<4x128xf32>
    %116 = vector.extract_strided_slice %115 {offsets = [0, 0], sizes = [1, 96], strides = [1, 1]} : vector<4x128xf32> to vector<1x96xf32>
    %117 = vector.extract_strided_slice %115 {offsets = [1, 0], sizes = [1, 32], strides = [1, 1]} : vector<4x128xf32> to vector<1x32xf32>
    %118 = vector.extract_strided_slice %115 {offsets = [2, 0], sizes = [1, 128], strides = [1, 1]} : vector<4x128xf32> to vector<1x128xf32>
    %119 = vector.extract_strided_slice %115 {offsets = [3, 0], sizes = [1, 32], strides = [1, 1]} : vector<4x128xf32> to vector<1x32xf32>
    %cst_45 = arith.constant dense<0.000000e+00> : vector<16xf32>
    %120 = vector.multi_reduction <add>, %113, %cst_45 [1] : vector<16x32xf32> to vector<16xf32>
    %121 = vector.shape_cast %120 : vector<16xf32> to vector<16x1xf32>
    %cst_46 = arith.constant 3.200000e+01 : f32
    %122 = vector.broadcast %cst_46 : f32 to vector<16x1xf32>
    %123 = arith.divf %121, %122 : vector<16x1xf32>
    %124 = vector.broadcast %123 : vector<16x1xf32> to vector<16x32xf32>
    %125 = arith.subf %113, %124 : vector<16x32xf32>
    %126 = arith.mulf %125, %125 : vector<16x32xf32>
    %cst_47 = arith.constant dense<0.000000e+00> : vector<16xf32>
    %127 = vector.multi_reduction <add>, %126, %cst_47 [1] : vector<16x32xf32> to vector<16xf32>
    %128 = vector.shape_cast %127 : vector<16xf32> to vector<16x1xf32>
    %cst_48 = arith.constant 3.200000e+01 : f32
    %129 = vector.broadcast %cst_48 : f32 to vector<16x1xf32>
    %130 = arith.divf %128, %129 : vector<16x1xf32>
    %131 = vector.broadcast %123 : vector<16x1xf32> to vector<16x32xf32>
    %132 = arith.subf %113, %131 : vector<16x32xf32>
    %cst_49 = arith.constant 9.99999997E-7 : f32
    %133 = vector.broadcast %cst_49 : f32 to vector<16x1xf32>
    %134 = arith.addf %130, %133 : vector<16x1xf32>
    %135 = math.rsqrt %134 : vector<16x1xf32>
    %136 = vector.broadcast %135 : vector<16x1xf32> to vector<16x32xf32>
    %137 = arith.mulf %132, %136 : vector<16x32xf32>
    %c1_50 = arith.constant 1 : index
    %c0_51 = arith.constant 0 : index
    %c0_52 = arith.constant 0 : index
    %138 = vector.load %arg4[%c1_50, %c0_51, %c0_52] : memref<2x32x96xf32, #tpu.memory_space<vmem>>, vector<1x32x96xf32>
    %139 = vector.shape_cast %138 : vector<1x32x96xf32> to vector<32x96xf32>
    %cst_53 = arith.constant dense<0.000000e+00> : vector<16x96xf32>
    %140 = tpu.matmul %137, %139, %cst_53 {dimension_numbers = #tpu.dot_dimension_numbers<[1], [0], [0], [1], [0, 0, 1, 1], [], []>} : vector<16x32xf32>, vector<32x96xf32>, vector<16x96xf32> -> vector<16x96xf32>
    %141 = vector.broadcast %116 : vector<1x96xf32> to vector<16x96xf32>
    %142 = arith.addf %140, %141 : vector<16x96xf32>
    %143 = vector.extract_strided_slice %142 {offsets = [0, 0], sizes = [16, 32], strides = [1, 1]} : vector<16x96xf32> to vector<16x32xf32>
    %144 = vector.extract_strided_slice %143 {offsets = [0, 0], sizes = [16, 8], strides = [1, 1]} : vector<16x32xf32> to vector<16x8xf32>
    %145 = vector.extract_strided_slice %143 {offsets = [0, 8], sizes = [16, 8], strides = [1, 1]} : vector<16x32xf32> to vector<16x8xf32>
    %146 = vector.extract_strided_slice %143 {offsets = [0, 16], sizes = [16, 8], strides = [1, 1]} : vector<16x32xf32> to vector<16x8xf32>
    %147 = vector.extract_strided_slice %143 {offsets = [0, 24], sizes = [16, 8], strides = [1, 1]} : vector<16x32xf32> to vector<16x8xf32>
    %148 = tpu.concatenate %144, %145, %146, %147 in 0 : vector<16x8xf32>, vector<16x8xf32>, vector<16x8xf32>, vector<16x8xf32> -> vector<64x8xf32>
    %149 = vector.extract_strided_slice %142 {offsets = [0, 32], sizes = [16, 32], strides = [1, 1]} : vector<16x96xf32> to vector<16x32xf32>
    %150 = vector.extract_strided_slice %149 {offsets = [0, 0], sizes = [16, 8], strides = [1, 1]} : vector<16x32xf32> to vector<16x8xf32>
    %151 = vector.extract_strided_slice %149 {offsets = [0, 8], sizes = [16, 8], strides = [1, 1]} : vector<16x32xf32> to vector<16x8xf32>
    %152 = vector.extract_strided_slice %149 {offsets = [0, 16], sizes = [16, 8], strides = [1, 1]} : vector<16x32xf32> to vector<16x8xf32>
    %153 = vector.extract_strided_slice %149 {offsets = [0, 24], sizes = [16, 8], strides = [1, 1]} : vector<16x32xf32> to vector<16x8xf32>
    %154 = tpu.concatenate %150, %151, %152, %153 in 0 : vector<16x8xf32>, vector<16x8xf32>, vector<16x8xf32>, vector<16x8xf32> -> vector<64x8xf32>
    %155 = vector.extract_strided_slice %142 {offsets = [0, 64], sizes = [16, 32], strides = [1, 1]} : vector<16x96xf32> to vector<16x32xf32>
    %156 = vector.extract_strided_slice %155 {offsets = [0, 0], sizes = [16, 8], strides = [1, 1]} : vector<16x32xf32> to vector<16x8xf32>
    %157 = vector.extract_strided_slice %155 {offsets = [0, 8], sizes = [16, 8], strides = [1, 1]} : vector<16x32xf32> to vector<16x8xf32>
    %158 = vector.extract_strided_slice %155 {offsets = [0, 16], sizes = [16, 8], strides = [1, 1]} : vector<16x32xf32> to vector<16x8xf32>
    %159 = vector.extract_strided_slice %155 {offsets = [0, 24], sizes = [16, 8], strides = [1, 1]} : vector<16x32xf32> to vector<16x8xf32>
    %160 = tpu.concatenate %156, %157, %158, %159 in 0 : vector<16x8xf32>, vector<16x8xf32>, vector<16x8xf32>, vector<16x8xf32> -> vector<64x8xf32>
    %cst_54 = arith.constant dense<0.000000e+00> : vector<64x64xf32>
    %161 = tpu.matmul %148, %154, %cst_54 {dimension_numbers = #tpu.dot_dimension_numbers<[1], [1], [0], [0], [0, 0, 1, 0], [], []>} : vector<64x8xf32>, vector<64x8xf32>, vector<64x64xf32> -> vector<64x64xf32>
    %162 = arith.addf %161, %0 : vector<64x64xf32>
    %cst_55 = arith.constant dense<0xFF800000> : vector<64xf32>
    %163 = vector.multi_reduction <maximumf>, %162, %cst_55 [1] : vector<64x64xf32> to vector<64xf32>
    %164 = vector.shape_cast %163 : vector<64xf32> to vector<64x1xf32>
    %165 = vector.broadcast %164 : vector<64x1xf32> to vector<64x64xf32>
    %166 = arith.subf %162, %165 : vector<64x64xf32>
    %167 = math.exp %166 : vector<64x64xf32>
    %cst_56 = arith.constant dense<0.000000e+00> : vector<64xf32>
    %168 = vector.multi_reduction <add>, %167, %cst_56 [1] : vector<64x64xf32> to vector<64xf32>
    %169 = vector.shape_cast %168 : vector<64xf32> to vector<64x1xf32>
    %170 = tpu.reciprocal %169 {approx = true} : vector<64x1xf32> -> vector<64x1xf32>
    %171 = vector.broadcast %170 : vector<64x1xf32> to vector<64x64xf32>
    %172 = arith.mulf %167, %171 : vector<64x64xf32>
    %cst_57 = arith.constant dense<0.000000e+00> : vector<64x8xf32>
    %173 = tpu.matmul %172, %160, %cst_57 {dimension_numbers = #tpu.dot_dimension_numbers<[1], [0], [0], [1], [0, 0, 1, 1], [], []>} : vector<64x64xf32>, vector<64x8xf32>, vector<64x8xf32> -> vector<64x8xf32>
    %174 = vector.extract_strided_slice %173 {offsets = [0, 0], sizes = [16, 8], strides = [1, 1]} : vector<64x8xf32> to vector<16x8xf32>
    %175 = vector.extract_strided_slice %173 {offsets = [16, 0], sizes = [16, 8], strides = [1, 1]} : vector<64x8xf32> to vector<16x8xf32>
    %176 = vector.extract_strided_slice %173 {offsets = [32, 0], sizes = [16, 8], strides = [1, 1]} : vector<64x8xf32> to vector<16x8xf32>
    %177 = vector.extract_strided_slice %173 {offsets = [48, 0], sizes = [16, 8], strides = [1, 1]} : vector<64x8xf32> to vector<16x8xf32>
    %178 = tpu.concatenate %174, %175, %176, %177 in 1 : vector<16x8xf32>, vector<16x8xf32>, vector<16x8xf32>, vector<16x8xf32> -> vector<16x32xf32>
    %c1_58 = arith.constant 1 : index
    %c0_59 = arith.constant 0 : index
    %c0_60 = arith.constant 0 : index
    %179 = vector.load %arg5[%c1_58, %c0_59, %c0_60] : memref<2x32x32xf32, #tpu.memory_space<vmem>>, vector<1x32x32xf32>
    %180 = vector.shape_cast %179 : vector<1x32x32xf32> to vector<32x32xf32>
    %cst_61 = arith.constant dense<0.000000e+00> : vector<16x32xf32>
    %181 = tpu.matmul %178, %180, %cst_61 {dimension_numbers = #tpu.dot_dimension_numbers<[1], [0], [0], [1], [0, 0, 1, 1], [], []>} : vector<16x32xf32>, vector<32x32xf32>, vector<16x32xf32> -> vector<16x32xf32>
    %182 = arith.addf %113, %181 : vector<16x32xf32>
    %183 = vector.broadcast %117 : vector<1x32xf32> to vector<16x32xf32>
    %184 = arith.addf %182, %183 : vector<16x32xf32>
    %cst_62 = arith.constant dense<0.000000e+00> : vector<16xf32>
    %185 = vector.multi_reduction <add>, %184, %cst_62 [1] : vector<16x32xf32> to vector<16xf32>
    %186 = vector.shape_cast %185 : vector<16xf32> to vector<16x1xf32>
    %cst_63 = arith.constant 3.200000e+01 : f32
    %187 = vector.broadcast %cst_63 : f32 to vector<16x1xf32>
    %188 = arith.divf %186, %187 : vector<16x1xf32>
    %189 = vector.broadcast %188 : vector<16x1xf32> to vector<16x32xf32>
    %190 = arith.subf %184, %189 : vector<16x32xf32>
    %191 = arith.mulf %190, %190 : vector<16x32xf32>
    %cst_64 = arith.constant dense<0.000000e+00> : vector<16xf32>
    %192 = vector.multi_reduction <add>, %191, %cst_64 [1] : vector<16x32xf32> to vector<16xf32>
    %193 = vector.shape_cast %192 : vector<16xf32> to vector<16x1xf32>
    %cst_65 = arith.constant 3.200000e+01 : f32
    %194 = vector.broadcast %cst_65 : f32 to vector<16x1xf32>
    %195 = arith.divf %193, %194 : vector<16x1xf32>
    %196 = vector.broadcast %188 : vector<16x1xf32> to vector<16x32xf32>
    %197 = arith.subf %184, %196 : vector<16x32xf32>
    %cst_66 = arith.constant 9.99999997E-7 : f32
    %198 = vector.broadcast %cst_66 : f32 to vector<16x1xf32>
    %199 = arith.addf %195, %198 : vector<16x1xf32>
    %200 = math.rsqrt %199 : vector<16x1xf32>
    %201 = vector.broadcast %200 : vector<16x1xf32> to vector<16x32xf32>
    %202 = arith.mulf %197, %201 : vector<16x32xf32>
    %c1_67 = arith.constant 1 : index
    %c0_68 = arith.constant 0 : index
    %c0_69 = arith.constant 0 : index
    %203 = vector.load %arg6[%c1_67, %c0_68, %c0_69] : memref<2x32x128xf32, #tpu.memory_space<vmem>>, vector<1x32x128xf32>
    %204 = vector.shape_cast %203 : vector<1x32x128xf32> to vector<32x128xf32>
    %cst_70 = arith.constant dense<0.000000e+00> : vector<16x128xf32>
    %205 = tpu.matmul %202, %204, %cst_70 {dimension_numbers = #tpu.dot_dimension_numbers<[1], [0], [0], [1], [0, 0, 1, 1], [], []>} : vector<16x32xf32>, vector<32x128xf32>, vector<16x128xf32> -> vector<16x128xf32>
    %206 = vector.broadcast %118 : vector<1x128xf32> to vector<16x128xf32>
    %207 = arith.addf %205, %206 : vector<16x128xf32>
    %cst_71 = arith.constant 5.000000e-01 : f32
    %208 = vector.broadcast %cst_71 : f32 to vector<16x128xf32>
    %209 = arith.mulf %208, %207 : vector<16x128xf32>
    %cst_72 = arith.constant 0.707106769 : f32
    %210 = vector.broadcast %cst_72 : f32 to vector<16x128xf32>
    %211 = arith.mulf %207, %210 : vector<16x128xf32>
    %212 = math.erf %211 : vector<16x128xf32>
    %cst_73 = arith.constant 1.000000e+00 : f32
    %213 = vector.broadcast %cst_73 : f32 to vector<16x128xf32>
    %214 = arith.addf %213, %212 : vector<16x128xf32>
    %215 = arith.mulf %209, %214 : vector<16x128xf32>
    %c1_74 = arith.constant 1 : index
    %c0_75 = arith.constant 0 : index
    %c0_76 = arith.constant 0 : index
    %216 = vector.load %arg7[%c1_74, %c0_75, %c0_76] : memref<2x128x32xf32, #tpu.memory_space<vmem>>, vector<1x128x32xf32>
    %217 = vector.shape_cast %216 : vector<1x128x32xf32> to vector<128x32xf32>
    %cst_77 = arith.constant dense<0.000000e+00> : vector<16x32xf32>
    %218 = tpu.matmul %215, %217, %cst_77 {dimension_numbers = #tpu.dot_dimension_numbers<[1], [0], [0], [1], [0, 0, 1, 1], [], []>} : vector<16x128xf32>, vector<128x32xf32>, vector<16x32xf32> -> vector<16x32xf32>
    %219 = vector.broadcast %119 : vector<1x32xf32> to vector<16x32xf32>
    %220 = arith.addf %218, %219 : vector<16x32xf32>
    %221 = arith.addf %184, %220 : vector<16x32xf32>
    %cst_78 = arith.constant dense<0.000000e+00> : vector<16xf32>
    %222 = vector.multi_reduction <add>, %221, %cst_78 [1] : vector<16x32xf32> to vector<16xf32>
    %223 = vector.shape_cast %222 : vector<16xf32> to vector<16x1xf32>
    %cst_79 = arith.constant 3.200000e+01 : f32
    %224 = vector.broadcast %cst_79 : f32 to vector<16x1xf32>
    %225 = arith.divf %223, %224 : vector<16x1xf32>
    %226 = vector.broadcast %225 : vector<16x1xf32> to vector<16x32xf32>
    %227 = arith.subf %221, %226 : vector<16x32xf32>
    %228 = arith.mulf %227, %227 : vector<16x32xf32>
    %cst_80 = arith.constant dense<0.000000e+00> : vector<16xf32>
    %229 = vector.multi_reduction <add>, %228, %cst_80 [1] : vector<16x32xf32> to vector<16xf32>
    %230 = vector.shape_cast %229 : vector<16xf32> to vector<16x1xf32>
    %cst_81 = arith.constant 3.200000e+01 : f32
    %231 = vector.broadcast %cst_81 : f32 to vector<16x1xf32>
    %232 = arith.divf %230, %231 : vector<16x1xf32>
    %233 = vector.broadcast %225 : vector<16x1xf32> to vector<16x32xf32>
    %234 = arith.subf %221, %233 : vector<16x32xf32>
    %cst_82 = arith.constant 9.99999997E-7 : f32
    %235 = vector.broadcast %cst_82 : f32 to vector<16x1xf32>
    %236 = arith.addf %232, %235 : vector<16x1xf32>
    %237 = math.rsqrt %236 : vector<16x1xf32>
    %238 = vector.broadcast %237 : vector<16x1xf32> to vector<16x32xf32>
    %239 = arith.mulf %234, %238 : vector<16x32xf32>
    %c0_83 = arith.constant 0 : index
    %c0_84 = arith.constant 0 : index
    %240 = vector.load %arg9[%c0_83, %c0_84] : memref<32x128xf32, #tpu.memory_space<vmem>>, vector<32x128xf32>
    %cst_85 = arith.constant dense<0.000000e+00> : vector<16x128xf32>
    %241 = tpu.matmul %239, %240, %cst_85 {dimension_numbers = #tpu.dot_dimension_numbers<[1], [0], [0], [1], [0, 0, 1, 1], [], []>} : vector<16x32xf32>, vector<32x128xf32>, vector<16x128xf32> -> vector<16x128xf32>
    %c0_86 = arith.constant 0 : index
    %c0_87 = arith.constant 0 : index
    %242 = vector.load %arg10[%c0_86, %c0_87] : memref<1x128xf32, #tpu.memory_space<vmem>>, vector<1x128xf32>
    %243 = vector.broadcast %242 : vector<1x128xf32> to vector<16x128xf32>
    %244 = arith.addf %241, %243 : vector<16x128xf32>
    %c0_88 = arith.constant 0 : index
    %c0_89 = arith.constant 0 : index
    %245 = vector.load %arg11[%c0_88, %c0_89] : memref<16x128xf32, #tpu.memory_space<vmem>>, vector<16x128xf32>
    tpu.vector_store %arg11[%c0_88, %c0_89], %244 {strides = array<i32>} : memref<16x128xf32, #tpu.memory_space<vmem>>, vector<16x128xf32>,
    return
  }
}

</mosaic_0001>

<bundles_post_ra>
// kernel: vit_forward.1
= control target key start
LH: loop header
LB: loop body
LE: loop exit
PB: predicated region body
PF: predicated region fallthrough
CT: control target
= control target key end

     0   :  { %vm295_vm0 = vcmask 261120   ;;  %s1915_s16 = smov 112   ;;  %s1916_s17 = smov 104   ;;  %vm411_vm8 = vcmask 64512   ;;  %vm485_vm9 = vcmask 523264   ;;  %vm689_vm10 = vcmask 130048   ;;  %s2974_s3 = inlined_call_operand.vmem [shape: f32[768,32], index: 3, kind: input, shape index: {}]   ;;  %s2975_s0 = inlined_call_operand.vmem [shape: f32[16,768], index: 0, kind: input, shape index: {}]   ;;  %s2976_s1 = inlined_call_operand.vmem [shape: f32[16,32], index: 1, kind: input, shape index: {}]   ;;  %s2977_s4 = inlined_call_operand.vmem [shape: f32[2,32,96], index: 4, kind: input, shape index: {}]   ;;  %s2978_s8 = inlined_call_operand.vmem [shape: f32[2,4,128], index: 8, kind: input, shape index: {}]   ;;  %s2979_s2 = inlined_call_operand.vmem [shape: f32[64,64], index: 2, kind: input, shape index: {}]   ;;  %s2980_s5 = inlined_call_operand.vmem [shape: f32[2,32,32], index: 5, kind: input, shape index: {}]   ;;  %s2981_s6 = inlined_call_operand.vmem [shape: f32[2,32,128], index: 6, kind: input, shape index: {}]   ;;  %s2982_s7 = inlined_call_operand.vmem [shape: f32[2,128,32], index: 7, kind: input, shape index: {}]   ;;  %s2983_s10 = inlined_call_operand.vmem [shape: f32[1,128], index: 10, kind: input, shape index: {}]   ;;  %s2984_s9 = inlined_call_operand.vmem [shape: f32[32,128], index: 9, kind: input, shape index: {}]   ;;  %s2985_s11 = inlined_call_operand.vmem [shape: f32[16,128], index: 11, kind: output, shape index: {}]  }
   0x1   :  { %v73_v0 = vld [vmem:[%s2974_s3 + $0x78] sm:$0xff]  ;;  %v72_v1 = vld [vmem:[%s2974_s3 + $0x70] sm:$0xff]  ;;  %v71_v4 = vld [vmem:[%s2974_s3 + $0x68] sm:$0xff]  ;;  %s1917_s18 = smov 120   ;;  %s1918_s19 = smov 96   ;;  %vm692_vm11 = vcmask 195584  }
   0x2   :  { %v89_v2 = vld [vmem:[%s2974_s3 + $0xf8] sm:$0xff]  ;;  %156 = vmatpush.msra.mxu0 %v73_v0  ;;  %v88_v3 = vld [vmem:[%s2974_s3 + $0xf0] sm:$0xff]  ;;  %v87_v5 = vld [vmem:[%s2974_s3 + $0xe8] sm:$0xff]  ;;  %s1919_s27 = smov 64   ;;  %s1920_s15 = smov 8  }
   0x3   :  { %179 = vmatpush.msra.mxu1 %v89_v2  ;;  %v70_v6 = vld [vmem:[%s2974_s3 + $0x60] sm:$0xff]  ;;  %v105_v8 = vld [vmem:[%s2974_s3 + $0x178] sm:$0xff]  ;;  %v104_v9 = vld [vmem:[%s2974_s3 + $0x170] sm:$0xff]  ;;  %s1921_s23 = smov 16   ;;  %s1922_s24 = smov 24  }
   0x4   :  { %157 = vmatpush.msra.mxu0 %v72_v1  ;;  %v86_v7 = vld [vmem:[%s2974_s3 + $0xe0] sm:$0xff]  ;;  %v121_v10 = vld [vmem:[%s2974_s3 + $0x1f8] sm:$0xff]  ;;  %202 = vmatpush.msra.mxu2 %v105_v8  ;;  %v103_v13 = vld [vmem:[%s2974_s3 + $0x168] sm:$0xff] }
   0x5   :  { %180 = vmatpush.msra.mxu1 %v88_v3  ;;  %v69_v11 = vld [vmem:[%s2974_s3 + $0x58] sm:$0xff]  ;;  %225 = vmatpush.msra.mxu3 %v121_v10  ;;  %v120_v14 = vld [vmem:[%s2974_s3 + $0x1f0] sm:$0xff]  ;;  %v119_v17 = vld [vmem:[%s2974_s3 + $0x1e8] sm:$0xff] }
   0x6   :  { %158 = vmatpush.msra.mxu0 %v71_v4  ;;  %v85_v12 = vld [vmem:[%s2974_s3 + $0xd8] sm:$0xff]  ;;  %v68_v15 = vld [vmem:[%s2974_s3 + $0x50] sm:$0xff]  ;;  %203 = vmatpush.msra.mxu2 %v104_v9  ;;  %v102_v18 = vld [vmem:[%s2974_s3 + $0x160] sm:$0xff] }
   0x7   :  { %181 = vmatpush.msra.mxu1 %v87_v5  ;;  %v84_v16 = vld [vmem:[%s2974_s3 + $0xd0] sm:$0xff]  ;;  %226 = vmatpush.msra.mxu3 %v120_v14  ;;  %v118_v19 = vld [vmem:[%s2974_s3 + $0x1e0] sm:$0xff]  ;;  %v67_v20 = vld [vmem:[%s2974_s3 + $0x48] sm:$0xff] }
   0x8   :  { %159 = vmatpush.msra.mxu0 %v70_v6  ;;  %v83_v21 = vld [vmem:[%s2974_s3 + $0xc8] sm:$0xff]  ;;  %204 = vmatpush.msra.mxu2 %v103_v13  ;;  %v101_v22 = vld [vmem:[%s2974_s3 + $0x158] sm:$0xff]  ;;  %v66_v24 = vld [vmem:[%s2974_s3 + $0x40] sm:$0xff] }
   0x9   :  { %182 = vmatpush.msra.mxu1 %v86_v7  ;;  %227 = vmatpush.msra.mxu3 %v119_v17  ;;  %v117_v23 = vld [vmem:[%s2974_s3 + $0x1d8] sm:$0xff]  ;;  %v82_v25 = vld [vmem:[%s2974_s3 + $0xc0] sm:$0xff]  ;;  %v100_v26 = vld [vmem:[%s2974_s3 + $0x150] sm:$0xff] }
   0xa   :  { %160 = vmatpush.msra.mxu0 %v69_v11  ;;  %205 = vmatpush.msra.mxu2 %v102_v18  ;;  %v116_v27 = vld [vmem:[%s2974_s3 + $0x1d0] sm:$0xff]  ;;  %v65_v28 = vld [vmem:[%s2974_s3 + $0x38] sm:$0xff]  ;;  %v99_v30 = vld [vmem:[%s2974_s3 + $0x148] sm:$0xff] }
   0xb   :  { %183 = vmatpush.msra.mxu1 %v85_v12  ;;  %228 = vmatpush.msra.mxu3 %v118_v19  ;;  %v81_v29 = vld [vmem:[%s2974_s3 + $0xb8] sm:$0xff]  ;;  %v115_v31 = vld [vmem:[%s2974_s3 + $0x1c8] sm:$0xff]  ;;  %v64_v32 = vld [vmem:[%s2974_s3 + $0x30] sm:$0xff] }
   0xc   :  { %161 = vmatpush.msra.mxu0 %v68_v15  ;;  %206 = vmatpush.msra.mxu2 %v101_v22  ;;  %v80_v33 = vld [vmem:[%s2974_s3 + $0xb0] sm:$0xff]  ;;  %v98_v34 = vld [vmem:[%s2974_s3 + $0x140] sm:$0xff]  ;;  %v63_v36 = vld [vmem:[%s2974_s3 + $0x28] sm:$0xff] }
   0xd   :  { %184 = vmatpush.msra.mxu1 %v84_v16  ;;  %229 = vmatpush.msra.mxu3 %v117_v23  ;;  %v114_v35 = vld [vmem:[%s2974_s3 + $0x1c0] sm:$0xff]  ;;  %v79_v37 = vld [vmem:[%s2974_s3 + $0xa8] sm:$0xff]  ;;  %v97_v38 = vld [vmem:[%s2974_s3 + $0x138] sm:$0xff] }
   0xe   :  { %162 = vmatpush.msra.mxu0 %v67_v20  ;;  %207 = vmatpush.msra.mxu2 %v100_v26  ;;  %v113_v39 = vld [vmem:[%s2974_s3 + $0x1b8] sm:$0xff]  ;;  %v62_v40 = vld [vmem:[%s2974_s3 + $0x20] sm:$0xff]  ;;  %v96_v42 = vld [vmem:[%s2974_s3 + $0x130] sm:$0xff] }
   0xf   :  { %185 = vmatpush.msra.mxu1 %v83_v21  ;;  %230 = vmatpush.msra.mxu3 %v116_v27  ;;  %v78_v41 = vld [vmem:[%s2974_s3 + $0xa0] sm:$0xff]  ;;  %v112_v43 = vld [vmem:[%s2974_s3 + $0x1b0] sm:$0xff]  ;;  %v61_v44 = vld [vmem:[%s2974_s3 + $0x18] sm:$0xff] }
  0x10   :  { %163 = vmatpush.msra.mxu0 %v66_v24  ;;  %208 = vmatpush.msra.mxu2 %v99_v30  ;;  %v77_v45 = vld [vmem:[%s2974_s3 + $0x98] sm:$0xff]  ;;  %v95_v46 = vld [vmem:[%s2974_s3 + $0x128] sm:$0xff]  ;;  %v60_v48 = vld [vmem:[%s2974_s3 + $0x10] sm:$0xff] }
  0x11   :  { %186 = vmatpush.msra.mxu1 %v82_v25  ;;  %231 = vmatpush.msra.mxu3 %v115_v31  ;;  %v111_v47 = vld [vmem:[%s2974_s3 + $0x1a8] sm:$0xff]  ;;  %v76_v49 = vld [vmem:[%s2974_s3 + $0x90] sm:$0xff]  ;;  %v94_v50 = vld [vmem:[%s2974_s3 + $0x120] sm:$0xff] }
  0x12   :  { %164 = vmatpush.msra.mxu0 %v65_v28  ;;  %209 = vmatpush.msra.mxu2 %v98_v34  ;;  %v110_v51 = vld [vmem:[%s2974_s3 + $0x1a0] sm:$0xff]  ;;  %v59_v52 = vld [vmem:[%s2974_s3 + $0x8] sm:$0xff]  ;;  %v93_v54 = vld [vmem:[%s2974_s3 + $0x118] sm:$0xff] }
  0x13   :  { %187 = vmatpush.msra.mxu1 %v81_v29  ;;  %232 = vmatpush.msra.mxu3 %v114_v35  ;;  %v75_v53 = vld [vmem:[%s2974_s3 + $0x88] sm:$0xff]  ;;  %v109_v55 = vld [vmem:[%s2974_s3 + $0x198] sm:$0xff]  ;;  %v58_v56 = vld [vmem:[%s2974_s3] sm:$0xff] }
  0x14   :  { %165 = vmatpush.msra.mxu0 %v64_v32  ;;  %210 = vmatpush.msra.mxu2 %v97_v38  ;;  %v74_v57 = vld [vmem:[%s2974_s3 + $0x80] sm:$0xff]  ;;  %v137_v58 = vld [vmem:[%s2974_s3 + $0x278] sm:$0xff]  ;;  %v92_v60 = vld [vmem:[%s2974_s3 + $0x110] sm:$0xff] }
  0x15   :  { %188 = vmatpush.msra.mxu1 %v80_v33  ;;  %233 = vmatpush.msra.mxu3 %v113_v39  ;;  %v153_v59 = vld [vmem:[%s2974_s3 + $0x2f8] sm:$0xff]  ;;  %v108_v61 = vld [vmem:[%s2974_s3 + $0x190] sm:$0xff]  ;;  %v91_v0 = vld [vmem:[%s2974_s3 + $0x108] sm:$0xff] }
  0x16   :  { %166 = vmatpush.msra.mxu0 %v63_v36  ;;  %211 = vmatpush.msra.mxu2 %v96_v42  ;;  %v136_v62 = vld [vmem:[%s2974_s3 + $0x270] sm:$0xff]  ;;  %v107_v1 = vld [vmem:[%s2974_s3 + $0x188] sm:$0xff]  ;;  %v90_v4 = vld [vmem:[%s2974_s3 + $0x100] sm:$0xff] }
  0x17   :  { %189 = vmatpush.msra.mxu1 %v79_v37  ;;  %234 = vmatpush.msra.mxu3 %v112_v43  ;;  %v152_v63 = vld [vmem:[%s2974_s3 + $0x2f0] sm:$0xff]  ;;  %v135_v2 = vld [vmem:[%s2974_s3 + $0x268] sm:$0xff]  ;;  %v106_v5 = vld [vmem:[%s2974_s3 + $0x180] sm:$0xff] }
  0x18   :  { %167 = vmatpush.msra.mxu0 %v62_v40  ;;  %212 = vmatpush.msra.mxu2 %v95_v46  ;;  %v151_v3 = vld [vmem:[%s2974_s3 + $0x2e8] sm:$0xff]  ;;  %v134_v6 = vld [vmem:[%s2974_s3 + $0x260] sm:$0xff]  ;;  %v48_v8 = vld [vmem:[%s2975_s0 + $0x10] sm:$0xff] }
  0x19   :  { %190 = vmatpush.msra.mxu1 %v78_v41  ;;  %235 = vmatpush.msra.mxu3 %v111_v47  ;;  %v150_v7 = vld [vmem:[%s2974_s3 + $0x2e0] sm:$0xff]  ;;  %v133_v10 = vld [vmem:[%s2974_s3 + $0x258] sm:$0xff]  ;;  %v47_v13 = vld [vmem:[%s2975_s0 + $0x8] sm:$0xff] }
  0x1a   :  { %168 = vmatpush.msra.mxu0 %v61_v44  ;;  %213 = vmatpush.msra.mxu2 %v94_v50  ;;  %v46_v9 = vld [vmem:[%s2975_s0] sm:$0xff]  ;;  %v149_v11 = vld [vmem:[%s2974_s3 + $0x2d8] sm:$0xff]  ;;  %v132_v14 = vld [vmem:[%s2974_s3 + $0x250] sm:$0xff] }
  0x1b   :  { %191 = vmatpush.msra.mxu1 %v77_v45  ;;  %236 = vmatpush.msra.mxu3 %v110_v51  ;;  %v49_v12 = vld [vmem:[%s2975_s0 + $0x18] sm:$0xff]  ;;  %v148_v15 = vld [vmem:[%s2974_s3 + $0x2d0] sm:$0xff]  ;;  %v131_v16 = vld [vmem:[%s2974_s3 + $0x248] sm:$0xff] }
  0x1c   :  { %169 = vmatpush.msra.mxu0 %v60_v48  ;;  %214 = vmatpush.msra.mxu2 %v93_v54  ;;  %v147_v17 = vld [vmem:[%s2974_s3 + $0x2c8] sm:$0xff]  ;;  %v130_v18 = vld [vmem:[%s2974_s3 + $0x240] sm:$0xff]  ;;  %v52_v21 = vld [vmem:[%s2975_s0 + $0x30] sm:$0xff] }
  0x1d   :  { %192 = vmatpush.msra.mxu1 %v76_v49  ;;  %237 = vmatpush.msra.mxu3 %v109_v55  ;;  %v146_v19 = vld [vmem:[%s2974_s3 + $0x2c0] sm:$0xff]  ;;  %v129_v22 = vld [vmem:[%s2974_s3 + $0x238] sm:$0xff]  ;;  %v55_v24 = vld [vmem:[%s2975_s0 + $0x48] sm:$0xff] }
  0x1e   :  { %170 = vmatpush.msra.mxu0 %v59_v52  ;;  %215 = vmatpush.msra.mxu2 %v92_v60  ;;  %v54_v20 = vld [vmem:[%s2975_s0 + $0x40] sm:$0xff]  ;;  %v145_v23 = vld [vmem:[%s2974_s3 + $0x2b8] sm:$0xff]  ;;  %v128_v26 = vld [vmem:[%s2974_s3 + $0x230] sm:$0xff] }
  0x1f   :  { %193 = vmatpush.msra.mxu1 %v75_v53  ;;  %238 = vmatpush.msra.mxu3 %v108_v61  ;;  %v53_v25 = vld [vmem:[%s2975_s0 + $0x38] sm:$0xff]  ;;  %v144_v27 = vld [vmem:[%s2974_s3 + $0x2b0] sm:$0xff]  ;;  %v127_v28 = vld [vmem:[%s2974_s3 + $0x228] sm:$0xff] }
  0x20   :  { %171 = vmatpush.msra.mxu0 %v58_v56  ;;  %216 = vmatpush.msra.mxu2 %v91_v0  ;;  %v143_v29 = vld [vmem:[%s2974_s3 + $0x2a8] sm:$0xff]  ;;  %v126_v30 = vld [vmem:[%s2974_s3 + $0x220] sm:$0xff]  ;;  %v125_v32 = vld [vmem:[%s2974_s3 + $0x218] sm:$0xff] }
  0x21   :  { %194 = vmatpush.msra.mxu1 %v74_v57  ;;  %239 = vmatpush.msra.mxu3 %v107_v1  ;;  %v142_v31 = vld [vmem:[%s2974_s3 + $0x2a0] sm:$0xff]  ;;  %v141_v33 = vld [vmem:[%s2974_s3 + $0x298] sm:$0xff]  ;;  %v124_v34 = vld [vmem:[%s2974_s3 + $0x210] sm:$0xff] }
  0x22   :  { %248 = vmatpush.msrb.mxu0 %v137_v58  ;;  %217 = vmatpush.msra.mxu2 %v90_v4  ;;  %v140_v35 = vld [vmem:[%s2974_s3 + $0x290] sm:$0xff]  ;;  %v123_v36 = vld [vmem:[%s2974_s3 + $0x208] sm:$0xff]  ;;  %v122_v38 = vld [vmem:[%s2974_s3 + $0x200] sm:$0xff] }
  0x23   :  { %271 = vmatpush.msrb.mxu1 %v153_v59  ;;  %240 = vmatpush.msra.mxu3 %v106_v5  ;;  %v139_v37 = vld [vmem:[%s2974_s3 + $0x288] sm:$0xff]  ;;  %v138_v39 = vld [vmem:[%s2974_s3 + $0x280] sm:$0xff]  ;;  %v56_v42 = vld [vmem:[%s2975_s0 + $0x50] sm:$0xff] }
  0x24   :  { %249 = vmatpush.msrb.mxu0 %v136_v62  ;;  %218 = vmatmul.f32.vlgmr.msra.gmra.mxu2 %v48_v8  ;;  %v50_v40 = vld [vmem:[%s2975_s0 + $0x20] sm:$0xff]  ;;  %v51_v41 = vld [vmem:[%s2975_s0 + $0x28] sm:$0xff]  ;;  %v57_v43 = vld [vmem:[%s2975_s0 + $0x58] sm:$0xff]  ;;  %v1914_v8 = vmov 32.0  }
  0x25   :  { %272 = vmatpush.msrb.mxu1 %v152_v63  ;;  %172 = vmatmul.f32.vlgmr.msra.gmra.mxu0 %v46_v9  ;;  %v154_v46 = vld [vmem:[%s2976_s1] sm:$0xff]  ;;  %v155_v52 = vld [vmem:[%s2976_s1 + $0x8] sm:$0xff]  ;;  %1813 = vrcp.f32 %v1914_v8 }
  0x26   :  { %250 = vmatpush.msrb.mxu0 %v135_v2  ;;  %241 = vmatmul.f32.vlgmr.msra.gmra.mxu3 %v49_v12 }
  0x27   :  { %273 = vmatpush.msrb.mxu1 %v151_v3 }
  0x28   :  { %251 = vmatpush.msrb.mxu0 %v134_v6  ;;  %195 = vmatmul.f32.vlgmr.msra.gmra.mxu1 %v47_v13 }
  0x29   :  { %274 = vmatpush.msrb.mxu1 %v150_v7 }
  0x2a   :  { %252 = vmatpush.msrb.mxu0 %v133_v10 }
  0x2b   :  { %275 = vmatpush.msrb.mxu1 %v149_v11  ;;  %v1814_v9 = vpop.eup %1813 }
  0x2c   :  { %253 = vmatpush.msrb.mxu0 %v132_v14  ;;  %221 = vmatmul.f32.gmra.mxu2 %v54_v20  ;;  %v303_v10 = vmul.f32 32.0, %v1814_v9  ;;  %vm307_vm1 = vweird.f32 %v1814_v9 }
  0x2d   :  { %276 = vmatpush.msrb.mxu1 %v148_v15  ;;  %175 = vmatmul.f32.gmra.mxu0 %v52_v21 }
  0x2e   :  { %254 = vmatpush.msrb.mxu0 %v131_v16  ;;  %244 = vmatmul.f32.gmra.mxu3 %v55_v24  ;;  %v304_v11 = vsub.f32 1.0, %v303_v10 }
  0x2f   :  { %277 = vmatpush.msrb.mxu1 %v147_v17 }
  0x30   :  { %255 = vmatpush.msrb.mxu0 %v130_v18  ;;  %198 = vmatmul.f32.gmra.mxu1 %v53_v25  ;;  %v305_v12 = vmul.f32 %v1814_v9, %v304_v11  ;;  %v350_v25 = vld [vmem:[%s2977_s4 + $0x18] sm:$0xff] }
  0x31   :  { %278 = vmatpush.msrb.mxu1 %v146_v19  ;;  %370 = vmatpush.msrb.mxu2 %v350_v25 }
  0x32   :  { %256 = vmatpush.msrb.mxu0 %v129_v22  ;;  %v306_v13 = vadd.f32 %v1814_v9, %v305_v12 }
  0x33   :  { %279 = vmatpush.msrb.mxu1 %v145_v23 }
  0x34   :  { %257 = vmatpush.msrb.mxu0 %v128_v26  ;;  %v2321_v14 = vsel %vm307_vm1, %v1814_v9, %v306_v13  ;;  %v349_v26 = vld [vmem:[%s2977_s4 + $0x10] sm:$0xff]  ;;  %v38_v9 = vld [vmem:[%s2979_s2] sm:$0xff]  ;;  %v39_v13 = vld [vmem:[%s2979_s2 + $0x8] sm:$0xff] }
  0x35   :  { %280 = vmatpush.msrb.mxu1 %v144_v27  ;;  %371 = vmatpush.msrb.mxu2 %v349_v26  ;;  %v348_v27 = vld [vmem:[%s2977_s4 + $0x8] sm:$0xff]  ;;  %v42_v26 = vld [vmem:[%s2979_s2 + $0x20] sm:$0xff] }
  0x36   :  { %258 = vmatpush.msrb.mxu0 %v127_v28  ;;  %v347_v28 = vld [vmem:[%s2977_s4] sm:$0xff] }
  0x37   :  { %281 = vmatpush.msrb.mxu1 %v143_v29  ;;  %372 = vmatpush.msrb.mxu2 %v348_v27 }
  0x38   :  { %259 = vmatpush.msrb.mxu0 %v126_v30 }
  0x39   :  { %282 = vmatpush.msrb.mxu1 %v142_v31  ;;  %373 = vmatpush.msrb.mxu2 %v347_v28 }
  0x3a   :  { %260 = vmatpush.msrb.mxu0 %v125_v32 }
  0x3b   :  { %283 = vmatpush.msrb.mxu1 %v141_v33 }
  0x3c   :  { %261 = vmatpush.msrb.mxu0 %v124_v34 }
  0x3d   :  { %284 = vmatpush.msrb.mxu1 %v140_v35 }
  0x3e   :  { %262 = vmatpush.msrb.mxu0 %v123_v36 }
  0x3f   :  { %285 = vmatpush.msrb.mxu1 %v139_v37 }
  0x40   :  { %263 = vmatpush.msrb.mxu0 %v122_v38 }
  0x41   :  { %286 = vmatpush.msrb.mxu1 %v138_v39  ;;  %264 = vmatmul.f32.vlgmr.msrb.gmra.mxu0 %v50_v40 }
  0x42   :  { %287 = vmatmul.f32.vlgmr.msrb.gmra.mxu1 %v51_v41 }
  0x49   :  { %267 = vmatmul.f32.gmra.mxu0 %v56_v42 }
  0x4a   :  { %290 = vmatmul.f32.gmra.mxu1 %v57_v43 }
  0xa2   :  { %v173_v44 = vpop.f32.mrf.mxu0 }
  0xa3   :  { %v174_v47 = vadd.f32 %v173_v44, %v154_v46 }
  0xa5   :  { %v196_v45 = vpop.f32.mrf.mxu1 }
  0xa6   :  { %v197_v51 = vadd.f32 %v196_v45, %v174_v47 }
  0xa7   :  { %v219_v48 = vpop.f32.mrf.mxu2 }
  0xa8   :  { %v220_v54 = vadd.f32 %v219_v48, %v197_v51  ;;  %v2348_v51 = vld [vmem:[%s2978_s8] sm:$0xf] }
  0xa9   :  { %v242_v53 = vpop.f32.mrf.mxu3 }
  0xaa   :  { %v176_v49 = vpop.f32.mrf.mxu0  ;;  %v243_v56 = vadd.f32 %v242_v53, %v220_v54 }
  0xab   :  { %v177_v55 = vadd.f32 %v176_v49, %v155_v52  ;;  %v351_v52 = vperm.slane %v2348_v51, 0 }
  0xad   :  { %v199_v50 = vpop.f32.mrf.mxu1 }
  0xae   :  { %v200_v57 = vadd.f32 %v199_v50, %v177_v55 }
  0xaf   :  { %v222_v58 = vpop.f32.mrf.mxu2 }
  0xb0   :  { %v223_v62 = vadd.f32 %v222_v58, %v200_v57 }
  0xb1   :  { %v245_v0 = vpop.f32.mrf.mxu3 }
  0xb2   :  { %v246_v2 = vadd.f32 %v245_v0, %v223_v62 }
  0xbe   :  { %v265_v59 = vpop.f32.mrf.mxu0 }
  0xbf   :  { %v288_v60 = vpop.f32.mrf.mxu1  ;;  %v266_v61 = vadd.f32 %v265_v59, %v243_v56 }
  0xc1   :  { %v2313_v63 = vadd.f32 %v288_v60, %v266_v61 }
  0xc3   :  { %v296_v1 = vsel %vm295_vm0, %v2313_v63, 0.0 }
  0xc4   :  { %297 = vadd.xlane.f32.xlu0 %v296_v1 }
  0xc6   :  { %v268_v3 = vpop.f32.mrf.mxu0 }
  0xc7   :  { %v291_v4 = vpop.f32.mrf.mxu1  ;;  %v269_v5 = vadd.f32 %v268_v3, %v246_v2 }
  0xc9   :  { %v2317_v6 = vadd.f32 %v291_v4, %v269_v5 }
  0xcb   :  { %v299_v7 = vsel %vm295_vm0, %v2317_v6, 0.0 }
  0xcc   :  { %300 = vadd.xlane.f32.xlu0 %v299_v7 }
 0x137   :  { %v298_v15 = vpop.xlane.xlu0 %297 }
 0x138   :  { %v309_v16 = vmul.f32 %v2321_v14, %v298_v15 }
 0x13a   :  { %v311_v17 = vsub.f32 %v2313_v63, %v309_v16 }
 0x13c   :  { %v313_v18 = vmul.f32 %v311_v17, %v311_v17 }
 0x13e   :  { %v315_v19 = vsel %vm295_vm0, %v313_v18, 0.0  ;;  %v40_v18 = vld [vmem:[%s2979_s2 + $0x10] sm:$0xff] }
 0x13f   :  { %316 = vadd.xlane.f32.xlu1 %v315_v19  ;;  %v301_v20 = vpop.xlane.xlu0 %300 }
 0x140   :  { %v310_v21 = vmul.f32 %v2321_v14, %v301_v20 }
 0x142   :  { %v312_v22 = vsub.f32 %v2317_v6, %v310_v21 }
 0x144   :  { %v314_v23 = vmul.f32 %v312_v22, %v312_v22 }
 0x146   :  { %v318_v24 = vsel %vm295_vm0, %v314_v23, 0.0 }
 0x147   :  { %319 = vadd.xlane.f32.xlu1 %v318_v24 }
 0x1b2   :  { %v317_v29 = vpop.xlane.xlu1 %316 }
 0x1b3   :  { %v321_v30 = vmul.f32 %v317_v29, %v2321_v14 }
 0x1b5   :  { %v323_v31 = vadd.f32 1e-06, %v321_v30 }
 0x1b7   :  { %1815 = vrsqrt.f32 %v323_v31  ;;  %vm331_vm3 = vweird.f32 %v323_v31 }
 0x1ba   :  { %v320_v32 = vpop.xlane.xlu1 %319 }
 0x1bb   :  { %v322_v33 = vmul.f32 %v320_v32, %v2321_v14  ;;  %v44_v32 = vld [vmem:[%s2979_s2 + $0x30] sm:$0xff] }
 0x1bd   :  { %v1816_v34 = vpop.eup %1815  ;;  %v324_v35 = vadd.f32 1e-06, %v322_v33 }
 0x1be   :  { %v326_v36 = vmul.f32 %v1816_v34, %v323_v31  ;;  %vm332_vm2 = vweird.f32 %v1816_v34 }
 0x1bf   :  { %1817 = vrsqrt.f32 %v324_v35  ;;  %vm333_vm4 = vmor %vm331_vm3, %vm332_vm2  ;;  %vm341_vm6 = vweird.f32 %v324_v35 }
 0x1c0   :  { %v327_v37 = vmul.f32 %v1816_v34, %v326_v36 }
 0x1c2   :  { %v328_v38 = vmul.f32 0.5, %v327_v37  ;;  %v2450_v37 = vld [vmem:[%s2979_s2 + $0x28] sm:$0xff] }
 0x1c4   :  { %v329_v39 = vsub.f32 1.5, %v328_v38 }
 0x1c5   :  { %v1818_v40 = vpop.eup %1817 }
 0x1c6   :  { %v330_v41 = vmul.f32 %v1816_v34, %v329_v39  ;;  %v336_v42 = vmul.f32 %v1818_v40, %v324_v35  ;;  %vm342_vm5 = vweird.f32 %v1818_v40 }
 0x1c7   :  { %vm343_vm7 = vmor %vm341_vm6, %vm342_vm5 }
 0x1c8   :  { %v337_v43 = vmul.f32 %v1818_v40, %v336_v42  ;;  %v334_v44 = vsel %vm333_vm4, %v1816_v34, %v330_v41 }
 0x1c9   :  { %v345_v45 = vmul.f32 %v334_v44, %v311_v17 }
 0x1ca   :  { %v338_v46 = vmul.f32 0.5, %v337_v43 }
 0x1cb   :  { %1668 = vmatmul.msk.f32.vlgmr.msrb.gmra.mxu2 %vm295_vm0, %v345_v45 }
 0x1cc   :  { %v339_v47 = vsub.f32 1.5, %v338_v46 }
 0x1ce   :  { %v340_v48 = vmul.f32 %v1818_v40, %v339_v47 }
 0x1d0   :  { %v344_v49 = vsel %vm343_vm7, %v1818_v40, %v340_v48  ;;  %v45_v40 = vld [vmem:[%s2979_s2 + $0x38] sm:$0xff] }
 0x1d1   :  { %v346_v50 = vmul.f32 %v344_v49, %v312_v22  ;;  %v41_v22 = vld [vmem:[%s2979_s2 + $0x18] sm:$0xff] }
 0x1d3   :  { %1669 = vmatmul.msk.f32.gmra.mxu2 %vm295_vm0, %v346_v50 }
 0x24e   :  { %v375_v53 = vpop.f32.mrf.mxu2 }
 0x24f   :  { %v2351_v54 = vadd.f32 %v375_v53, %v351_v52 }
 0x251   :  { %387 = vrot.lane.b32.xlu1 %v2351_v54, %s1915_s16 }
 0x256   :  { %v378_v55 = vpop.f32.mrf.mxu2 }
 0x257   :  { %v2355_v56 = vadd.f32 %v378_v55, %v351_v52 }
 0x259   :  { %389 = vrot.lane.b32.xlu0 %v2355_v56, %s1915_s16  ;;  %393 = vrot.lane.b32.xlu2 %v2355_v56, %s1916_s17  ;;  %v1787_v44 = vpack.i.bf16 %v2351_v54, %v2355_v56 }
 0x261   :  { %391 = vrot.lane.b32.xlu2 %v2351_v54, %s1916_s17 }
 0x269   :  { %385 = vrot.lane.b32.xlu2 %v2355_v56, %s1917_s18 }
 0x271   :  { %383 = vrot.lane.b32.xlu2 %v2351_v54, %s1917_s18 }
 0x2b3   :  { %v2367_v57 = vpop.permute.xlu2 %393 }
 0x2b4   :  { %409 = vrot.lane.b32.xlu2 %v2367_v57, %s1918_s19 }
 0x2bb   :  { %v2371_v58 = vpop.permute.xlu2 %391 }
 0x2bc   :  { %407 = vrot.lane.b32.xlu0 %v2371_v58, %s1918_s19  ;;  %v1772_v35 = vpack.i.bf16 %v2371_v58, %v2367_v57 }
 0x2c3   :  { %v2375_v59 = vpop.permute.xlu2 %385  ;;  %v2377_v60 = vpop.permute.xlu1 %387 }
 0x2c4   :  { %401 = vrot.lane.b32.xlu0 %v2375_v59, %s1918_s19  ;;  %403 = vrot.lane.b32.xlu1 %v2377_v60, %s1918_s19 }
 0x2cb   :  { %v390_v61 = vpop.permute.xlu0 %389  ;;  %v2388_v62 = vpop.permute.xlu2 %383 }
 0x2cc   :  { %405 = vrot.lane.b32.xlu2 %v390_v61, %s1918_s19  ;;  %395 = vrot.lane.b32.xlu0 %v2351_v54, %s1918_s19  ;;  %v1777_v30 = vpack.i.bf16 %v2377_v60, %v390_v61 }
 0x2cd   :  { %397 = vrot.lane.b32.xlu1 %v2355_v56, %s1918_s19 }
 0x2d4   :  { %399 = vrot.lane.b32.xlu2 %v2388_v62, %s1918_s19 }
 0x30e   :  { %v410_v0 = vpop.permute.xlu2 %409 }
 0x30f   :  { %1670 = vmatpush.xpose.msk.msrb.mxu3 %vm411_vm8, %v410_v0 }
 0x326   :  { %v406_v2 = vpop.permute.xlu2 %405 }
 0x32e   :  { %v408_v1 = vpop.permute.xlu0 %407  ;;  %v400_v5 = vpop.permute.xlu2 %399 }
 0x32f   :  { %1671 = vmatpush.xpose.msk.msrb.mxu3 %vm411_vm8, %v408_v1 }
 0x333   :  { %1672 = vmatpush.xpose.msk.msrb.mxu3 %vm411_vm8, %v406_v2 }
 0x336   :  { %v404_v3 = vpop.permute.xlu1 %403  ;;  %v402_v4 = vpop.permute.xlu0 %401 }
 0x337   :  { %1673 = vmatpush.xpose.msk.msrb.mxu3 %vm411_vm8, %v404_v3 }
 0x33b   :  { %1674 = vmatpush.xpose.msk.msrb.mxu3 %vm411_vm8, %v402_v4 }
 0x33e   :  { %v396_v8 = vpop.permute.xlu0 %395 }
 0x33f   :  { %1675 = vmatpush.xpose.msk.msrb.mxu3 %vm411_vm8, %v400_v5  ;;  %v398_v7 = vpop.permute.xlu1 %397 }
 0x343   :  { %1676 = vmatpush.xpose.msk.msrb.mxu3 %vm411_vm8, %v398_v7 }
 0x347   :  { %1677 = vmatpush.xpose.msk.msrb.mxu3 %vm411_vm8, %v396_v8  ;;  %v1782_v8 = vpack.i.bf16 %v2388_v62, %v2375_v59 }
 0x34a   :  { %1678 = vmatmul.msk.f32.vlgmr.msrb.gmra.mxu3 %vm411_vm8, %v2351_v54 }
 0x352   :  { %1679 = vmatmul.msk.f32.gmra.mxu3 %vm411_vm8, %v2355_v56 }
 0x35a   :  { %1680 = vmatmul.msk.f32.gmra.mxu3 %vm411_vm8, %v2388_v62 }
 0x362   :  { %1681 = vmatmul.msk.f32.gmra.mxu3 %vm411_vm8, %v2375_v59 }
 0x36a   :  { %1682 = vmatmul.msk.f32.gmra.mxu3 %vm411_vm8, %v2377_v60 }
 0x372   :  { %1683 = vmatmul.msk.f32.gmra.mxu3 %vm411_vm8, %v390_v61 }
 0x37a   :  { %1684 = vmatmul.msk.f32.gmra.mxu3 %vm411_vm8, %v2371_v58 }
 0x382   :  { %1685 = vmatmul.msk.f32.gmra.mxu3 %vm411_vm8, %v2367_v57 }
 0x3cd   :  { %v461_v10 = vpop.f32.mrf.mxu3 }
 0x3ce   :  { %v462_v11 = vadd.f32 %v461_v10, %v38_v9 }
 0x3d0   :  { %v486_v12 = vsel %vm485_vm9, %v462_v11, -inf }
 0x3d1   :  { %487 = vmax.xlane.f32.xlu2 %v486_v12 }
 0x3d5   :  { %v464_v15 = vpop.f32.mrf.mxu3 }
 0x3d6   :  { %v465_v16 = vadd.f32 %v464_v15, %v39_v13 }
 0x3d8   :  { %v489_v17 = vsel %vm485_vm9, %v465_v16, -inf }
 0x3d9   :  { %490 = vmax.xlane.f32.xlu1 %v489_v17 }
 0x3dd   :  { %v467_v19 = vpop.f32.mrf.mxu3 }
 0x3de   :  { %v2426_v20 = vadd.f32 %v467_v19, %v40_v18 }
 0x3e0   :  { %v492_v21 = vsel %vm485_vm9, %v2426_v20, -inf }
 0x3e1   :  { %493 = vmax.xlane.f32.xlu0 %v492_v21 }
 0x3e5   :  { %v470_v23 = vpop.f32.mrf.mxu3 }
 0x3e6   :  { %v471_v24 = vadd.f32 %v470_v23, %v41_v22 }
 0x3e8   :  { %v495_v25 = vsel %vm485_vm9, %v471_v24, -inf }
 0x3e9   :  { %496 = vmax.xlane.f32.xlu2 %v495_v25 }
 0x3ed   :  { %v473_v27 = vpop.f32.mrf.mxu3 }
 0x3ee   :  { %v474_v28 = vadd.f32 %v473_v27, %v42_v26 }
 0x3f0   :  { %v498_v29 = vsel %vm485_vm9, %v474_v28, -inf }
 0x3f1   :  { %499 = vmax.xlane.f32.xlu1 %v498_v29 }
 0x3f5   :  { %v476_v31 = vpop.f32.mrf.mxu3  ;;  %1778 = vrot.lane.b32.xlu0 %v1777_v30, %s1919_s27 }
 0x3f6   :  { %v2453_v38 = vadd.f32 %v476_v31, %v2450_v37 }
 0x3f8   :  { %v501_v39 = vsel %vm485_vm9, %v2453_v38, -inf }
 0x3fd   :  { %v479_v33 = vpop.f32.mrf.mxu3 }
 0x3fe   :  { %v480_v34 = vadd.f32 %v479_v33, %v44_v32 }
 0x400   :  { %v504_v36 = vsel %vm485_vm9, %v480_v34, -inf }
 0x401   :  { %505 = vmax.xlane.f32.xlu1 %v504_v36  ;;  %1773 = vrot.lane.b32.xlu2 %v1772_v35, %s1919_s27 }
 0x405   :  { %v482_v41 = vpop.f32.mrf.mxu3 }
 0x406   :  { %v2460_v42 = vadd.f32 %v482_v41, %v45_v40 }
 0x408   :  { %v507_v43 = vsel %vm485_vm9, %v2460_v42, -inf }
 0x41f   :  { %502 = vmax.xlane.f32.xlu0 %v501_v39 }
 0x42a   :  { %508 = vmax.xlane.f32.xlu2 %v507_v43 }
 0x433   :  { %1788 = vrot.lane.b32.xlu0 %v1787_v44, %s1919_s27 }
 0x444   :  { %v488_v45 = vpop.xlane.xlu2 %487 }
 0x445   :  { %v510_v46 = vsub.f32 %v462_v11, %v488_v45 }
 0x447   :  { %v518_v47 = vmul.f32 1.442695, %v510_v46 }
 0x449   :  { %1819 = vpow2.f32 %v518_v47 }
 0x44c   :  { %v491_v48 = vpop.xlane.xlu1 %490 }
 0x44d   :  { %v511_v49 = vsub.f32 %v465_v16, %v491_v48 }
 0x44f   :  { %v2467_v50 = vpop.eup %1819  ;;  %v520_v52 = vmul.f32 1.442695, %v511_v49 }
 0x450   :  { %v534_v53 = vsel %vm485_vm9, %v2467_v50, 0.0 }
 0x451   :  { %535 = vadd.xlane.f32.xlu1 %v534_v53  ;;  %1821 = vpow2.f32 %v520_v52 }
 0x454   :  { %v494_v58 = vpop.xlane.xlu0 %493 }
 0x455   :  { %v512_v18 = vsub.f32 %v2426_v20, %v494_v58 }
 0x457   :  { %v2471_v55 = vpop.eup %1821  ;;  %v522_v19 = vmul.f32 1.442695, %v512_v18 }
 0x458   :  { %v537_v54 = vsel %vm485_vm9, %v2471_v55, 0.0 }
 0x45c   :  { %v497_v57 = vpop.xlane.xlu2 %496 }
 0x45d   :  { %v513_v56 = vsub.f32 %v471_v24, %v497_v57  ;;  %538 = vadd.xlane.f32.xlu0 %v537_v54 }
 0x45f   :  { %v524_v60 = vmul.f32 1.442695, %v513_v56 }
 0x461   :  { %1823 = vpow2.f32 %v524_v60 }
 0x464   :  { %v500_v61 = vpop.xlane.xlu1 %499  ;;  %v1774_v0 = vpop.permute.xlu2 %1773 }
 0x465   :  { %v514_v1 = vsub.f32 %v474_v28, %v500_v61  ;;  %v1775_v2 = vunpack.i.l.bf16 %v1774_v0  ;;  %v1776_v5 = vunpack.i.h.bf16 %v1774_v0 }
 0x467   :  { %v2475_v3 = vpop.eup %1823  ;;  %v526_v4 = vmul.f32 1.442695, %v514_v1  ;;  %v1779_v7 = vpop.permute.xlu0 %1778  ;;  %630 = vmatpush.msra.mxu2 %v1775_v2 }
 0x468   :  { %v1780_v9 = vunpack.i.l.bf16 %v1779_v7  ;;  %v543_v10 = vsel %vm485_vm9, %v2475_v3, 0.0  ;;  %v1781_v11 = vunpack.i.h.bf16 %v1779_v7 }
 0x469   :  { %1825 = vpow2.f32 %v526_v4  ;;  %544 = vadd.xlane.f32.xlu2 %v543_v10  ;;  %631 = vmatpush.msra.mxu2 %v1776_v5 }
 0x46a   :  { %1783 = vrot.lane.b32.xlu1 %v1782_v8, %s1919_s27  ;;  %v698_v8 = vld [vmem:[%s2980_s5 + $0x18] sm:$0xff] }
 0x46b   :  { %632 = vmatpush.msra.mxu2 %v1780_v9  ;;  %v697_v9 = vld [vmem:[%s2980_s5 + $0x10] sm:$0xff]  ;;  %717 = vmatpush.msra.mxu3 %v698_v8 }
 0x46d   :  { %633 = vmatpush.msra.mxu2 %v1781_v11  ;;  %718 = vmatpush.msra.mxu3 %v697_v9 }
 0x46f   :  { %v2482_v12 = vpop.eup %1825 }
 0x470   :  { %v546_v13 = vsel %vm485_vm9, %v2482_v12, 0.0 }
 0x471   :  { %547 = vadd.xlane.f32.xlu2 %v546_v13 }
 0x474   :  { %v506_v15 = vpop.xlane.xlu1 %505 }
 0x475   :  { %v516_v59 = vsub.f32 %v480_v34, %v506_v15  ;;  %v696_v15 = vld [vmem:[%s2980_s5 + $0x8] sm:$0xff] }
 0x476   :  { %719 = vmatpush.msra.mxu3 %v696_v15  ;;  %v912_v15 = vld [vmem:[%s2982_s7 + $0x68] sm:$0xff] }
 0x477   :  { %v530_v62 = vmul.f32 1.442695, %v516_v59  ;;  %v695_v59 = vld [vmem:[%s2980_s5] sm:$0xff] }
 0x478   :  { %720 = vmatpush.msra.mxu3 %v695_v59  ;;  %v781_v59 = vperm.slane %v2348_v51, 2 }
 0x479   :  { %1827 = vpow2.f32 %v530_v62 }
 0x47a   :  { %1829 = vpow2.f32 %v522_v19 }
 0x47f   :  { %v2486_v16 = vpop.eup %1827 }
 0x480   :  { %v552_v17 = vsel %vm485_vm9, %v2486_v16, 0.0  ;;  %v1830_v21 = vpop.eup %1829 }
 0x481   :  { %553 = vadd.xlane.f32.xlu2 %v552_v17  ;;  %v540_v24 = vsel %vm485_vm9, %v1830_v21, 0.0 }
 0x492   :  { %v503_v22 = vpop.xlane.xlu0 %502 }
 0x493   :  { %v515_v23 = vsub.f32 %v2453_v38, %v503_v22 }
 0x494   :  { %541 = vadd.xlane.f32.xlu1 %v540_v24 }
 0x495   :  { %v528_v25 = vmul.f32 1.442695, %v515_v23 }
 0x497   :  { %1831 = vpow2.f32 %v528_v25 }
 0x49d   :  { %v1832_v26 = vpop.eup %1831  ;;  %v509_v27 = vpop.xlane.xlu2 %508 }
 0x49e   :  { %v517_v28 = vsub.f32 %v2460_v42, %v509_v27  ;;  %v549_v29 = vsel %vm485_vm9, %v1832_v26, 0.0 }
 0x49f   :  { %550 = vadd.xlane.f32.xlu0 %v549_v29 }
 0x4a0   :  { %v532_v30 = vmul.f32 1.442695, %v517_v28  ;;  %v730_v28 = vperm.slane %v2348_v51, 1 }
 0x4a2   :  { %1833 = vpow2.f32 %v532_v30 }
 0x4a5   :  { %v1789_v33 = vpop.permute.xlu0 %1788 }
 0x4a6   :  { %v1790_v40 = vunpack.i.l.bf16 %v1789_v33  ;;  %v1791_v41 = vunpack.i.h.bf16 %v1789_v33 }
 0x4a8   :  { %v1834_v20 = vpop.eup %1833 }
 0x4a9   :  { %v555_v31 = vsel %vm485_vm9, %v1834_v20, 0.0 }
 0x4aa   :  { %556 = vadd.xlane.f32.xlu0 %v555_v31 }
 0x4c4   :  { %v536_v32 = vpop.xlane.xlu1 %535 }
 0x4c5   :  { %1835 = vrcp.f32 %v536_v32 }
 0x4cb   :  { %v1836_v39 = vpop.eup %1835 }
 0x4cc   :  { %v566_v42 = vmul.f32 %v1836_v39, %v2467_v50 }
 0x4d0   :  { %v539_v38 = vpop.xlane.xlu0 %538 }
 0x4d1   :  { %1837 = vrcp.f32 %v539_v38 }
 0x4d7   :  { %v1838_v43 = vpop.eup %1837 }
 0x4d8   :  { %v567_v44 = vmul.f32 %v1838_v43, %v2471_v55 }
 0x4dc   :  { %v1784_v34 = vpop.permute.xlu1 %1783  ;;  %v545_v46 = vpop.xlane.xlu2 %544 }
 0x4dd   :  { %v1785_v35 = vunpack.i.l.bf16 %v1784_v34  ;;  %v1786_v36 = vunpack.i.h.bf16 %v1784_v34 }
 0x4df   :  { %634 = vmatpush.msra.mxu2 %v1785_v35 }
 0x4e1   :  { %635 = vmatpush.msra.mxu2 %v1786_v36 }
 0x4e3   :  { %636 = vmatpush.msra.mxu2 %v1790_v40 }
 0x4e4   :  { %v548_v49 = vpop.xlane.xlu2 %547 }
 0x4e5   :  { %637 = vmatpush.msra.mxu2 %v1791_v41 }
 0x4e6   :  { %1686 = vmatmul.msk.f32.vlgmr.msra.gmra.mxu2 %vm485_vm9, %v566_v42 }
 0x4ee   :  { %1687 = vmatmul.msk.f32.gmra.mxu2 %vm485_vm9, %v567_v44 }
 0x4f4   :  { %v554_v54 = vpop.xlane.xlu2 %553 }
 0x507   :  { %v542_v45 = vpop.xlane.xlu1 %541 }
 0x508   :  { %1839 = vrcp.f32 %v542_v45  ;;  %v780_v45 = vld [vmem:[%s2981_s6 + $0x18] sm:$0xff] }
 0x509   :  { %1841 = vrcp.f32 %v545_v46  ;;  %800 = vmatpush.msra.mxu1 %v780_v45  ;;  %v779_v46 = vld [vmem:[%s2981_s6 + $0x10] sm:$0xff] }
 0x50a   :  { %1843 = vrcp.f32 %v548_v49  ;;  %v901_v45 = vld [vmem:[%s2982_s7 + $0x10] sm:$0xff] }
 0x50b   :  { %801 = vmatpush.msra.mxu1 %v779_v46 }
 0x50e   :  { %v1840_v47 = vpop.eup %1839 }
 0x50f   :  { %v568_v48 = vmul.f32 %v1840_v47, %v1830_v21  ;;  %v1842_v52 = vpop.eup %1841  ;;  %v778_v47 = vld [vmem:[%s2981_s6 + $0x8] sm:$0xff] }
 0x510   :  { %v569_v50 = vmul.f32 %v1842_v52, %v2475_v3  ;;  %v1844_v57 = vpop.eup %1843  ;;  %802 = vmatpush.msra.mxu1 %v778_v47 }
 0x511   :  { %1688 = vmatmul.msk.f32.gmra.mxu2 %vm485_vm9, %v568_v48  ;;  %v570_v55 = vmul.f32 %v1844_v57, %v2482_v12  ;;  %v777_v48 = vld [vmem:[%s2981_s6] sm:$0xff] }
 0x512   :  { %v551_v53 = vpop.xlane.xlu0 %550  ;;  %803 = vmatpush.msra.mxu1 %v777_v48 }
 0x513   :  { %1845 = vrcp.f32 %v551_v53 }
 0x514   :  { %1847 = vrcp.f32 %v554_v54 }
 0x519   :  { %1689 = vmatmul.msk.f32.gmra.mxu2 %vm485_vm9, %v569_v50  ;;  %v1846_v56 = vpop.eup %1845 }
 0x51a   :  { %v571_v58 = vmul.f32 %v1846_v56, %v1832_v26  ;;  %v1848_v61 = vpop.eup %1847 }
 0x51b   :  { %v572_v0 = vmul.f32 %v1848_v61, %v2486_v16 }
 0x51d   :  { %v557_v60 = vpop.xlane.xlu0 %556 }
 0x51e   :  { %1849 = vrcp.f32 %v557_v60 }
 0x521   :  { %1690 = vmatmul.msk.f32.gmra.mxu2 %vm485_vm9, %v570_v55 }
 0x524   :  { %v1850_v1 = vpop.eup %1849 }
 0x525   :  { %v573_v2 = vmul.f32 %v1850_v1, %v1834_v20 }
 0x529   :  { %1691 = vmatmul.msk.f32.gmra.mxu2 %vm485_vm9, %v571_v58 }
 0x531   :  { %1692 = vmatmul.msk.f32.gmra.mxu2 %vm485_vm9, %v572_v0 }
 0x539   :  { %1693 = vmatmul.msk.f32.gmra.mxu2 %vm485_vm9, %v573_v2 }
 0x569   :  { %v639_v3 = vpop.f32.mrf.mxu2 }
 0x571   :  { %v642_v4 = vpop.f32.mrf.mxu2 }
 0x594   :  { %v645_v5 = vpop.f32.mrf.mxu2 }
 0x595   :  { %665 = vrot.lane.b32.xlu1 %v645_v5, %s1920_s15 }
 0x59c   :  { %v648_v7 = vpop.f32.mrf.mxu2 }
 0x59d   :  { %667 = vrot.lane.b32.xlu1 %v648_v7, %s1920_s15 }
 0x5a4   :  { %v651_v10 = vpop.f32.mrf.mxu2 }
 0x5a5   :  { %673 = vrot.lane.b32.xlu2 %v651_v10, %s1921_s23 }
 0x5ac   :  { %v654_v11 = vpop.f32.mrf.mxu2 }
 0x5b4   :  { %v657_v12 = vpop.f32.mrf.mxu2 }
 0x5b5   :  { %681 = vrot.lane.b32.xlu0 %v657_v12, %s1922_s24  ;;  %v914_v12 = vld [vmem:[%s2982_s7 + $0x78] sm:$0xff] }
 0x5b6   :  { %916 = vmatpush.msra.mxu0 %v914_v12 }
 0x5bc   :  { %v660_v13 = vpop.f32.mrf.mxu2 }
 0x5bd   :  { %675 = vrot.lane.b32.xlu0 %v654_v11, %s1921_s23  ;;  %683 = vrot.lane.b32.xlu2 %v660_v13, %s1922_s24  ;;  %v913_v13 = vld [vmem:[%s2982_s7 + $0x70] sm:$0xff] }
 0x5be   :  { %917 = vmatpush.msra.mxu0 %v913_v13 }
 0x5c0   :  { %918 = vmatpush.msra.mxu0 %v912_v15 }
 0x5ff   :  { %v674_v17 = vpop.permute.xlu2 %673 }
 0x607   :  { %v666_v62 = vpop.permute.xlu1 %665 }
 0x608   :  { %v687_v16 = vsel %vm411_vm8, %v639_v3, %v666_v62  ;;  %v911_v62 = vld [vmem:[%s2982_s7 + $0x60] sm:$0xff] }
 0x609   :  { %v690_v18 = vsel %vm689_vm10, %v687_v16, %v674_v17  ;;  %919 = vmatpush.msra.mxu0 %v911_v62  ;;  %v910_v16 = vld [vmem:[%s2982_s7 + $0x58] sm:$0xff] }
 0x60b   :  { %920 = vmatpush.msra.mxu0 %v910_v16 }
 0x60f   :  { %v668_v22 = vpop.permute.xlu1 %667 }
 0x610   :  { %v688_v23 = vsel %vm411_vm8, %v642_v4, %v668_v22  ;;  %v908_v22 = vld [vmem:[%s2982_s7 + $0x48] sm:$0xff] }
 0x617   :  { %v684_v25 = vpop.permute.xlu2 %683 }
 0x627   :  { %v682_v19 = vpop.permute.xlu0 %681 }
 0x628   :  { %v693_v21 = vsel %vm692_vm11, %v690_v18, %v682_v19  ;;  %v909_v19 = vld [vmem:[%s2982_s7 + $0x50] sm:$0xff] }
 0x629   :  { %1694 = vmatmul.msk.f32.vlgmr.msra.gmra.mxu3 %vm295_vm0, %v693_v21  ;;  %921 = vmatpush.msra.mxu0 %v909_v19 }
 0x62b   :  { %922 = vmatpush.msra.mxu0 %v908_v22 }
 0x62f   :  { %v676_v24 = vpop.permute.xlu0 %675 }
 0x630   :  { %v691_v26 = vsel %vm689_vm10, %v688_v23, %v676_v24  ;;  %v907_v24 = vld [vmem:[%s2982_s7 + $0x40] sm:$0xff] }
 0x631   :  { %v694_v27 = vsel %vm692_vm11, %v691_v26, %v684_v25  ;;  %923 = vmatpush.msra.mxu0 %v907_v24  ;;  %v906_v26 = vld [vmem:[%s2982_s7 + $0x38] sm:$0xff] }
 0x632   :  { %1695 = vmatmul.msk.f32.gmra.mxu3 %vm295_vm0, %v694_v27 }
 0x633   :  { %924 = vmatpush.msra.mxu0 %v906_v26 }
 0x6ac   :  { %v722_v29 = vpop.f32.mrf.mxu3 }
 0x6ad   :  { %v728_v30 = vadd.f32 %v722_v29, %v2313_v63 }
 0x6af   :  { %v2537_v20 = vadd.f32 %v730_v28, %v728_v30  ;;  %v905_v30 = vld [vmem:[%s2982_s7 + $0x30] sm:$0xff] }
 0x6b0   :  { %925 = vmatpush.msra.mxu0 %v905_v30 }
 0x6b1   :  { %v733_v31 = vsel %vm295_vm0, %v2537_v20, 0.0 }
 0x6b2   :  { %734 = vadd.xlane.f32.xlu1 %v733_v31 }
 0x6b5   :  { %v725_v32 = vpop.f32.mrf.mxu3 }
 0x6b6   :  { %v729_v33 = vadd.f32 %v725_v32, %v2317_v6 }
 0x6b8   :  { %v2542_v34 = vadd.f32 %v730_v28, %v729_v33 }
 0x6ba   :  { %v736_v35 = vsel %vm295_vm0, %v2542_v34, 0.0 }
 0x6bb   :  { %737 = vadd.xlane.f32.xlu0 %v736_v35  ;;  %v904_v35 = vld [vmem:[%s2982_s7 + $0x28] sm:$0xff] }
 0x6bc   :  { %926 = vmatpush.msra.mxu0 %v904_v35 }
 0x725   :  { %v735_v36 = vpop.xlane.xlu1 %734 }
 0x726   :  { %v739_v38 = vmul.f32 %v735_v36, %v2321_v14 }
 0x728   :  { %v741_v63 = vsub.f32 %v2537_v20, %v739_v38 }
 0x72a   :  { %v743_v39 = vmul.f32 %v741_v63, %v741_v63 }
 0x72c   :  { %v745_v40 = vsel %vm295_vm0, %v743_v39, 0.0  ;;  %v903_v39 = vld [vmem:[%s2982_s7 + $0x20] sm:$0xff] }
 0x72d   :  { %746 = vadd.xlane.f32.xlu2 %v745_v40  ;;  %927 = vmatpush.msra.mxu0 %v903_v39 }
 0x72e   :  { %v738_v41 = vpop.xlane.xlu0 %737 }
 0x72f   :  { %v740_v42 = vmul.f32 %v738_v41, %v2321_v14 }
 0x731   :  { %v742_v6 = vsub.f32 %v2542_v34, %v740_v42  ;;  %v902_v42 = vld [vmem:[%s2982_s7 + $0x18] sm:$0xff] }
 0x732   :  { %928 = vmatpush.msra.mxu0 %v902_v42 }
 0x733   :  { %v744_v43 = vmul.f32 %v742_v6, %v742_v6 }
 0x734   :  { %929 = vmatpush.msra.mxu0 %v901_v45 }
 0x735   :  { %v748_v44 = vsel %vm295_vm0, %v744_v43, 0.0 }
 0x736   :  { %749 = vadd.xlane.f32.xlu1 %v748_v44 }
 0x7a0   :  { %v747_v49 = vpop.xlane.xlu2 %746 }
 0x7a1   :  { %v751_v52 = vmul.f32 %v747_v49, %v2321_v14  ;;  %v900_v49 = vld [vmem:[%s2982_s7 + $0x8] sm:$0xff] }
 0x7a2   :  { %930 = vmatpush.msra.mxu0 %v900_v49 }
 0x7a3   :  { %v753_v50 = vadd.f32 1e-06, %v751_v52 }
 0x7a5   :  { %1851 = vrsqrt.f32 %v753_v50  ;;  %vm761_vm13 = vweird.f32 %v753_v50 }
 0x7a9   :  { %v750_v53 = vpop.xlane.xlu1 %749 }
 0x7aa   :  { %v752_v57 = vmul.f32 %v750_v53, %v2321_v14  ;;  %v899_v53 = vld [vmem:[%s2982_s7] sm:$0xff] }
 0x7ab   :  { %v1852_v55 = vpop.eup %1851  ;;  %931 = vmatpush.msra.mxu0 %v899_v53 }
 0x7ac   :  { %v756_v54 = vmul.f32 %v1852_v55, %v753_v50  ;;  %v754_v56 = vadd.f32 1e-06, %v752_v57  ;;  %vm762_vm12 = vweird.f32 %v1852_v55 }
 0x7ad   :  { %vm763_vm14 = vmor %vm761_vm13, %vm762_vm12 }
 0x7ae   :  { %v757_v58 = vmul.f32 %v1852_v55, %v756_v54  ;;  %1853 = vrsqrt.f32 %v754_v56  ;;  %vm771_vm1 = vweird.f32 %v754_v56 }
 0x7b0   :  { %v758_v60 = vmul.f32 0.5, %v757_v58 }
 0x7b2   :  { %v759_v61 = vsub.f32 1.5, %v758_v60 }
 0x7b4   :  { %v1854_v0 = vpop.eup %1853  ;;  %v760_v1 = vmul.f32 %v1852_v55, %v759_v61 }
 0x7b5   :  { %v766_v2 = vmul.f32 %v1854_v0, %v754_v56  ;;  %vm772_vm15 = vweird.f32 %v1854_v0 }
 0x7b6   :  { %v764_v3 = vsel %vm763_vm14, %v1852_v55, %v760_v1  ;;  %vm773_vm2 = vmor %vm771_vm1, %vm772_vm15 }
 0x7b7   :  { %v775_v4 = vmul.f32 %v764_v3, %v741_v63  ;;  %v767_v5 = vmul.f32 %v1854_v0, %v766_v2 }
 0x7b9   :  { %v768_v7 = vmul.f32 0.5, %v767_v5  ;;  %1696 = vmatmul.msk.f32.vlgmr.msra.gmra.mxu1 %vm295_vm0, %v775_v4 }
 0x7bb   :  { %v769_v8 = vsub.f32 1.5, %v768_v7 }
 0x7bd   :  { %v770_v9 = vmul.f32 %v1854_v0, %v769_v8 }
 0x7bf   :  { %v774_v10 = vsel %vm773_vm2, %v1854_v0, %v770_v9 }
 0x7c0   :  { %v776_v11 = vmul.f32 %v774_v10, %v742_v6 }
 0x7c2   :  { %1697 = vmatmul.msk.f32.gmra.mxu1 %vm295_vm0, %v776_v11 }
 0x836   :  { %v805_v17 = vpop.f32.mrf.mxu1 }
 0x837   :  { %v2584_v18 = vadd.f32 %v805_v17, %v781_v59 }
 0x839   :  { %v2590_v21 = vmul.f32 0.70710677, %v2584_v18 }
 0x83b   :  { %v815_v23 = vmul.f32 %v2590_v21, %v2590_v21 }
 0x83d   :  { %v816_v25 = vmin.f32 %v815_v23, 16.0 }
 0x83f   :  { %v817_v27 = vmul.f32 2.1237322e-06, %v816_v25  ;;  %v828_v28 = vmul.f32 3.8918573e-05, %v816_v25  ;;  %v808_v29 = vpop.f32.mrf.mxu1 }
 0x840   :  { %v2606_v31 = vadd.f32 %v808_v29, %v781_v59 }
 0x841   :  { %v818_v32 = vadd.f32 0.00028619796, %v817_v27  ;;  %v829_v33 = vadd.f32 0.001143296, %v828_v28 }
 0x842   :  { %v2612_v36 = vmul.f32 0.70710677, %v2606_v31  ;;  %v812_v53 = vmul.f32 0.5, %v2606_v31 }
 0x843   :  { %v819_v38 = vmul.f32 %v818_v32, %v816_v25  ;;  %v830_v63 = vmul.f32 %v829_v33, %v816_v25 }
 0x844   :  { %v855_v40 = vmul.f32 %v2612_v36, %v2612_v36 }
 0x845   :  { %v831_v41 = vadd.f32 0.014752088, %v830_v63  ;;  %v820_v6 = vadd.f32 0.0036580483, %v819_v38 }
 0x846   :  { %v856_v43 = vmin.f32 %v855_v40, 16.0 }
 0x847   :  { %v832_v44 = vmul.f32 %v831_v41, %v816_v25  ;;  %v821_v52 = vmul.f32 %v820_v6, %v816_v25 }
 0x848   :  { %v857_v46 = vmul.f32 2.1237322e-06, %v856_v43  ;;  %v868_v47 = vmul.f32 3.8918573e-05, %v856_v43 }
 0x849   :  { %v833_v48 = vadd.f32 0.112945676, %v832_v44  ;;  %v822_v60 = vadd.f32 0.05243302, %v821_v52  ;;  %v811_v44 = vmul.f32 0.5, %v2584_v18  ;;  %v915_v18 = vperm.slane %v2348_v51, 3 }
 0x84a   :  { %v858_v50 = vadd.f32 0.00028619796, %v857_v46  ;;  %v869_v57 = vadd.f32 0.001143296, %v868_v47 }
 0x84b   :  { %v834_v55 = vmul.f32 %v833_v48, %v816_v25  ;;  %v823_v4 = vmul.f32 %v822_v60, %v816_v25 }
 0x84c   :  { %v859_v54 = vmul.f32 %v858_v50, %v856_v43  ;;  %v870_v56 = vmul.f32 %v869_v57, %v856_v43 }
 0x84d   :  { %v835_v58 = vadd.f32 0.4994258, %v834_v55  ;;  %v824_v9 = vadd.f32 0.18741608, %v823_v4 }
 0x84e   :  { %v871_v61 = vadd.f32 0.014752088, %v870_v56  ;;  %v860_v1 = vadd.f32 0.0036580483, %v859_v54 }
 0x84f   :  { %v836_v0 = vmul.f32 %v835_v58, %v816_v25  ;;  %v825_v15 = vmul.f32 %v824_v9, %v816_v25  ;;  %v1704_v9 = vld [vmem:[%s2977_s4 + $0x38] sm:$0xff] }
 0x850   :  { %v872_v2 = vmul.f32 %v871_v61, %v856_v43  ;;  %v861_v7 = vmul.f32 %v860_v1, %v856_v43  ;;  %1011 = vmatpush.msrb.mxu1 %v1704_v9 }
 0x851   :  { %v837_v3 = vadd.f32 1.0, %v836_v0  ;;  %v826_v22 = vadd.f32 1.1283791, %v825_v15 }
 0x852   :  { %v873_v5 = vadd.f32 0.112945676, %v872_v2  ;;  %v862_v11 = vadd.f32 0.05243302, %v861_v7 }
 0x853   :  { %1855 = vrcp.f32 %v837_v3  ;;  %v849_v19 = vand.u32 2147483648, %v837_v3  ;;  %v847_v24 = vand.u32 2147483647, %v837_v3  ;;  %vm843_vm4 = vweird.f32 %v837_v3 }
 0x854   :  { %v874_v8 = vmul.f32 %v873_v5, %v856_v43  ;;  %v863_v16 = vmul.f32 %v862_v11, %v856_v43  ;;  %v827_v30 = vmul.f32 %v826_v22, %v2590_v21  ;;  %v1702_v11 = vld [vmem:[%s2977_s4 + $0x28] sm:$0xff] }
 0x855   :  { %v850_v28 = vor.u32 1.1754944e-38, %v849_v19  ;;  %vm848_vm6 = vcmp.eq.f32.partialorder %v847_v24, 8.507059e+37 }
 0x856   :  { %v875_v10 = vadd.f32 0.4994258, %v874_v8  ;;  %v864_v26 = vadd.f32 0.18741608, %v863_v16 }
 0x858   :  { %v876_v12 = vmul.f32 %v875_v10, %v856_v43  ;;  %v865_v33 = vmul.f32 %v864_v26, %v856_v43  ;;  %v1703_v10 = vld [vmem:[%s2977_s4 + $0x30] sm:$0xff] }
 0x859   :  { %v1856_v13 = vpop.eup %1855  ;;  %1012 = vmatpush.msrb.mxu1 %v1703_v10 }
 0x85a   :  { %v839_v59 = vmul.f32 %v1856_v13, %v837_v3  ;;  %v877_v62 = vadd.f32 1.0, %v876_v12  ;;  %vm844_vm3 = vweird.f32 %v1856_v13  ;;  %v866_v41 = vadd.f32 1.1283791, %v865_v33  ;;  %v1701_v12 = vld [vmem:[%s2977_s4 + $0x20] sm:$0xff] }
 0x85b   :  { %vm845_vm5 = vmor %vm843_vm4, %vm844_vm3  ;;  %1013 = vmatpush.msrb.mxu1 %v1702_v11 }
 0x85c   :  { %v840_v17 = vsub.f32 1.0, %v839_v59  ;;  %1857 = vrcp.f32 %v877_v62  ;;  %v889_v40 = vand.u32 2147483648, %v877_v62  ;;  %v887_v6 = vand.u32 2147483647, %v877_v62 }
 0x85d   :  { %vm883_vm12 = vweird.f32 %v877_v62  ;;  %v867_v48 = vmul.f32 %v866_v41, %v2612_v36  ;;  %1014 = vmatpush.msrb.mxu1 %v1701_v12  ;;  %v1910_v12 = vld [vmem:[%s2979_s2 + $0x18] sm:$0xff] }
 0x85e   :  { %v841_v23 = vmul.f32 %v1856_v13, %v840_v17  ;;  %v890_v21 = vor.u32 1.1754944e-38, %v889_v40  ;;  %vm888_vm14 = vcmp.eq.f32.partialorder %v887_v6, 8.507059e+37  ;;  %v2671_v40 = vld [vmem:[%s2978_s8 + $0x4] sm:$0xf] }
 0x85f   :  { %v992_v41 = vperm.slane %v2671_v40, 0 }
 0x860   :  { %v842_v27 = vadd.f32 %v1856_v13, %v841_v23 }
 0x862   :  { %v1858_v29 = vpop.eup %1857  ;;  %v846_v32 = vsel %vm845_vm5, %v1856_v13, %v842_v27 }
 0x863   :  { %v851_v25 = vsel %vm848_vm6, %v850_v28, %v846_v32  ;;  %v879_v35 = vmul.f32 %v1858_v29, %v877_v62  ;;  %vm884_vm7 = vweird.f32 %v1858_v29 }
 0x864   :  { %v852_v38 = vmul.f32 %v851_v25, %v827_v30  ;;  %vm885_vm13 = vmor %vm883_vm12, %vm884_vm7 }
 0x865   :  { %v880_v63 = vsub.f32 1.0, %v879_v35 }
 0x866   :  { %v1698_v39 = vclamps-f32 %v852_v38, 1.0 }
 0x867   :  { %v881_v42 = vmul.f32 %v1858_v29, %v880_v63 }
 0x868   :  { %v895_v45 = vadd.f32 1.0, %v1698_v39 }
 0x869   :  { %v882_v46 = vadd.f32 %v1858_v29, %v881_v42 }
 0x86a   :  { %v897_v47 = vmul.f32 %v895_v45, %v811_v44 }
 0x86b   :  { %v886_v43 = vsel %vm885_vm13, %v1858_v29, %v882_v46 }
 0x86c   :  { %932 = vmatmul.f32.vlgmr.msra.gmra.mxu0 %v897_v47  ;;  %v891_v49 = vsel %vm888_vm14, %v890_v21, %v886_v43 }
 0x86d   :  { %v892_v52 = vmul.f32 %v891_v49, %v867_v48 }
 0x86f   :  { %v1699_v50 = vclamps-f32 %v892_v52, 1.0 }
 0x871   :  { %v896_v57 = vadd.f32 1.0, %v1699_v50 }
 0x873   :  { %v898_v55 = vmul.f32 %v896_v57, %v812_v53 }
 0x875   :  { %935 = vmatmul.f32.gmra.mxu0 %v898_v55 }
 0x8e9   :  { %v933_v54 = vpop.f32.mrf.mxu0 }
 0x8ea   :  { %v934_v56 = vadd.f32 %v933_v54, %v915_v18 }
 0x8ec   :  { %v2637_v58 = vadd.f32 %v934_v56, %v2537_v20 }
 0x8ee   :  { %v943_v36 = vsel %vm295_vm0, %v2637_v58, 0.0 }
 0x8ef   :  { %944 = vadd.xlane.f32.xlu0 %v943_v36 }
 0x8f2   :  { %v936_v60 = vpop.f32.mrf.mxu0 }
 0x8f3   :  { %v937_v61 = vadd.f32 %v936_v60, %v915_v18 }
 0x8f5   :  { %v2642_v0 = vadd.f32 %v937_v61, %v2542_v34 }
 0x8f7   :  { %v946_v31 = vsel %vm295_vm0, %v2642_v0, 0.0 }
 0x8f8   :  { %947 = vadd.xlane.f32.xlu2 %v946_v31 }
 0x962   :  { %v945_v1 = vpop.xlane.xlu0 %944 }
 0x963   :  { %v949_v51 = vmul.f32 %v945_v1, %v2321_v14 }
 0x965   :  { %v951_v2 = vsub.f32 %v2637_v58, %v949_v51  ;;  %v1907_v51 = vld [vmem:[%s2979_s2] sm:$0xff] }
 0x967   :  { %v953_v20 = vmul.f32 %v951_v2, %v951_v2 }
 0x969   :  { %v955_v3 = vsel %vm295_vm0, %v953_v20, 0.0 }
 0x96a   :  { %956 = vadd.xlane.f32.xlu1 %v955_v3 }
 0x96b   :  { %v948_v4 = vpop.xlane.xlu2 %947 }
 0x96c   :  { %v950_v5 = vmul.f32 %v948_v4, %v2321_v14  ;;  %v1908_v4 = vld [vmem:[%s2979_s2 + $0x8] sm:$0xff] }
 0x96e   :  { %v952_v7 = vsub.f32 %v2642_v0, %v950_v5 }
 0x970   :  { %v954_v34 = vmul.f32 %v952_v7, %v952_v7 }
 0x972   :  { %v958_v8 = vsel %vm295_vm0, %v954_v34, 0.0 }
 0x973   :  { %959 = vadd.xlane.f32.xlu0 %v958_v8  ;;  %v1909_v8 = vld [vmem:[%s2979_s2 + $0x10] sm:$0xff] }
 0x9dd   :  { %v957_v13 = vpop.xlane.xlu1 %956 }
 0x9de   :  { %v961_v15 = vmul.f32 %v957_v13, %v2321_v14 }
 0x9e0   :  { %v963_v59 = vadd.f32 1e-06, %v961_v15 }
 0x9e2   :  { %1859 = vrsqrt.f32 %v963_v59  ;;  %vm971_vm1 = vweird.f32 %v963_v59 }
 0x9e6   :  { %v960_v62 = vpop.xlane.xlu0 %959 }
 0x9e7   :  { %v962_v16 = vmul.f32 %v960_v62, %v2321_v14  ;;  %v1911_v62 = vld [vmem:[%s2979_s2 + $0x20] sm:$0xff] }
 0x9e8   :  { %v1860_v17 = vpop.eup %1859 }
 0x9e9   :  { %v966_v19 = vmul.f32 %v1860_v17, %v963_v59  ;;  %v964_v22 = vadd.f32 1e-06, %v962_v16  ;;  %vm972_vm15 = vweird.f32 %v1860_v17 }
 0x9ea   :  { %vm973_vm2 = vmor %vm971_vm1, %vm972_vm15 }
 0x9eb   :  { %v967_v23 = vmul.f32 %v1860_v17, %v966_v19  ;;  %1861 = vrsqrt.f32 %v964_v22  ;;  %vm981_vm4 = vweird.f32 %v964_v22 }
 0x9ed   :  { %v968_v24 = vmul.f32 0.5, %v967_v23 }
 0x9ef   :  { %v969_v26 = vsub.f32 1.5, %v968_v24 }
 0x9f1   :  { %v1862_v27 = vpop.eup %1861  ;;  %v970_v28 = vmul.f32 %v1860_v17, %v969_v26  ;;  %v1912_v26 = vld [vmem:[%s2979_s2 + $0x30] sm:$0xff] }
 0x9f2   :  { %v976_v29 = vmul.f32 %v1862_v27, %v964_v22  ;;  %vm982_vm3 = vweird.f32 %v1862_v27 }
 0x9f3   :  { %v974_v30 = vsel %vm973_vm2, %v1860_v17, %v970_v28  ;;  %vm983_vm5 = vmor %vm981_vm4, %vm982_vm3 }
 0x9f4   :  { %v985_v32 = vmul.f32 %v974_v30, %v951_v2  ;;  %v977_v25 = vmul.f32 %v1862_v27, %v976_v29 }
 0x9f6   :  { %v978_v33 = vmul.f32 0.5, %v977_v25  ;;  %1705 = vmatmul.msk.f32.vlgmr.msrb.gmra.mxu1 %vm295_vm0, %v985_v32  ;;  %v1913_v32 = vld [vmem:[%s2979_s2 + $0x38] sm:$0xff] }
 0x9f8   :  { %v979_v35 = vsub.f32 1.5, %v978_v33 }
 0x9fa   :  { %v980_v38 = vmul.f32 %v1862_v27, %v979_v35 }
 0x9fc   :  { %v984_v63 = vsel %vm983_vm5, %v1862_v27, %v980_v38 }
 0x9fd   :  { %v986_v39 = vmul.f32 %v984_v63, %v952_v7 }
 0x9ff   :  { %1706 = vmatmul.msk.f32.gmra.mxu1 %vm295_vm0, %v986_v39 }
 0xa73   :  { %v1016_v42 = vpop.f32.mrf.mxu1 }
 0xa74   :  { %v2674_v6 = vadd.f32 %v1016_v42, %v992_v41 }
 0xa76   :  { %1032 = vrot.lane.b32.xlu1 %v2674_v6, %s1916_s17 }
 0xa7c   :  { %v1019_v44 = vpop.f32.mrf.mxu1 }
 0xa7d   :  { %v2678_v45 = vadd.f32 %v1019_v44, %v992_v41 }
 0xa7e   :  { %1024 = vrot.lane.b32.xlu1 %v2674_v6, %s1917_s18 }
 0xa7f   :  { %1030 = vrot.lane.b32.xlu0 %v2678_v45, %s1915_s16  ;;  %1034 = vrot.lane.b32.xlu2 %v2678_v45, %s1916_s17  ;;  %v1807_v29 = vpack.i.bf16 %v2674_v6, %v2678_v45 }
 0xa87   :  { %1026 = vrot.lane.b32.xlu0 %v2678_v45, %s1917_s18  ;;  %1028 = vrot.lane.b32.xlu2 %v2674_v6, %s1915_s16 }
 0xad9   :  { %v1035_v46 = vpop.permute.xlu2 %1034 }
 0xada   :  { %1050 = vrot.lane.b32.xlu2 %v1035_v46, %s1918_s19 }
 0xae1   :  { %v2691_v47 = vpop.permute.xlu2 %1028 }
 0xae2   :  { %1044 = vrot.lane.b32.xlu2 %v2691_v47, %s1918_s19 }
 0xae8   :  { %v1033_v21 = vpop.permute.xlu1 %1032 }
 0xae9   :  { %1048 = vrot.lane.b32.xlu0 %v1033_v21, %s1918_s19  ;;  %v1792_v52 = vpack.i.bf16 %v1033_v21, %v1035_v46 }
 0xaea   :  { %1038 = vrot.lane.b32.xlu2 %v2678_v45, %s1918_s19 }
 0xaf0   :  { %v2702_v43 = vpop.permute.xlu1 %1024 }
 0xaf1   :  { %v2698_v48 = vpop.permute.xlu0 %1030 }
 0xaf2   :  { %1046 = vrot.lane.b32.xlu1 %v2698_v48, %s1918_s19 }
 0xaf9   :  { %v2704_v49 = vpop.permute.xlu0 %1026 }
 0xafa   :  { %1040 = vrot.lane.b32.xlu1 %v2702_v43, %s1918_s19  ;;  %1042 = vrot.lane.b32.xlu0 %v2704_v49, %s1918_s19 }
 0xb02   :  { %1036 = vrot.lane.b32.xlu0 %v2674_v6, %s1918_s19  ;;  %1793 = vrot.lane.b32.xlu1 %v1792_v52, %s1919_s27 }
 0xb34   :  { %v1051_v50 = vpop.permute.xlu2 %1050 }
 0xb35   :  { %1707 = vmatpush.xpose.msk.msra.mxu1 %vm411_vm8, %v1051_v50 }
 0xb3c   :  { %v1045_v55 = vpop.permute.xlu2 %1044 }
 0xb44   :  { %v1039_v56 = vpop.permute.xlu2 %1038 }
 0xb5b   :  { %v1049_v53 = vpop.permute.xlu0 %1048 }
 0xb5c   :  { %1708 = vmatpush.xpose.msk.msra.mxu1 %vm411_vm8, %v1049_v53 }
 0xb64   :  { %v1047_v57 = vpop.permute.xlu1 %1046 }
 0xb65   :  { %1709 = vmatpush.xpose.msk.msra.mxu1 %vm411_vm8, %v1047_v57 }
 0xb69   :  { %1710 = vmatpush.xpose.msk.msra.mxu1 %vm411_vm8, %v1045_v55  ;;  %v1802_v55 = vpack.i.bf16 %v2702_v43, %v2704_v49 }
 0xb6c   :  { %v1041_v18 = vpop.permute.xlu1 %1040  ;;  %v1043_v54 = vpop.permute.xlu0 %1042 }
 0xb6d   :  { %1711 = vmatpush.xpose.msk.msra.mxu1 %vm411_vm8, %v1043_v54 }
 0xb71   :  { %1712 = vmatpush.xpose.msk.msra.mxu1 %vm411_vm8, %v1041_v18 }
 0xb74   :  { %v1794_v36 = vpop.permute.xlu1 %1793  ;;  %v1037_v31 = vpop.permute.xlu0 %1036 }
 0xb75   :  { %v1795_v60 = vunpack.i.l.bf16 %v1794_v36  ;;  %1713 = vmatpush.xpose.msk.msra.mxu1 %vm411_vm8, %v1039_v56  ;;  %v1796_v61 = vunpack.i.h.bf16 %v1794_v36 }
 0xb77   :  { %1269 = vmatpush.msrb.mxu0 %v1795_v60 }
 0xb79   :  { %1714 = vmatpush.xpose.msk.msra.mxu1 %vm411_vm8, %v1037_v31  ;;  %1270 = vmatpush.msrb.mxu0 %v1796_v61 }
 0xb7c   :  { %1715 = vmatmul.msk.f32.vlgmr.msra.gmra.mxu1 %vm411_vm8, %v2674_v6 }
 0xb84   :  { %1716 = vmatmul.msk.f32.gmra.mxu1 %vm411_vm8, %v2678_v45 }
 0xb8c   :  { %1717 = vmatmul.msk.f32.gmra.mxu1 %vm411_vm8, %v2702_v43 }
 0xb94   :  { %1718 = vmatmul.msk.f32.gmra.mxu1 %vm411_vm8, %v2704_v49 }
 0xb9c   :  { %1719 = vmatmul.msk.f32.gmra.mxu1 %vm411_vm8, %v2691_v47 }
 0xba4   :  { %1720 = vmatmul.msk.f32.gmra.mxu1 %vm411_vm8, %v2698_v48 }
 0xbac   :  { %1721 = vmatmul.msk.f32.gmra.mxu1 %vm411_vm8, %v1033_v21 }
 0xbb4   :  { %1722 = vmatmul.msk.f32.gmra.mxu1 %vm411_vm8, %v1035_v46 }
 0xbf9   :  { %v1101_v1 = vpop.f32.mrf.mxu1 }
 0xbfa   :  { %v1102_v2 = vadd.f32 %v1907_v51, %v1101_v1 }
 0xbfc   :  { %v1125_v20 = vsel %vm485_vm9, %v1102_v2, -inf }
 0xbfd   :  { %1126 = vmax.xlane.f32.xlu1 %v1125_v20 }
 0xc01   :  { %v1104_v3 = vpop.f32.mrf.mxu1 }
 0xc02   :  { %v1105_v5 = vadd.f32 %v1908_v4, %v1104_v3 }
 0xc04   :  { %v1128_v7 = vsel %vm485_vm9, %v1105_v5, -inf }
 0xc05   :  { %1129 = vmax.xlane.f32.xlu2 %v1128_v7 }
 0xc09   :  { %v1107_v34 = vpop.f32.mrf.mxu1 }
 0xc0a   :  { %v2746_v9 = vadd.f32 %v1909_v8, %v1107_v34 }
 0xc0c   :  { %v1131_v10 = vsel %vm485_vm9, %v2746_v9, -inf }
 0xc0d   :  { %1132 = vmax.xlane.f32.xlu0 %v1131_v10 }
 0xc11   :  { %v1110_v11 = vpop.f32.mrf.mxu1 }
 0xc12   :  { %v1111_v13 = vadd.f32 %v1910_v12, %v1110_v11 }
 0xc14   :  { %v1134_v15 = vsel %vm485_vm9, %v1111_v13, -inf }
 0xc15   :  { %1135 = vmax.xlane.f32.xlu1 %v1134_v15 }
 0xc19   :  { %v1113_v59 = vpop.f32.mrf.mxu1 }
 0xc1a   :  { %v1114_v16 = vadd.f32 %v1911_v62, %v1113_v59 }
 0xc1c   :  { %v1137_v17 = vsel %vm485_vm9, %v1114_v16, -inf }
 0xc1d   :  { %1138 = vmax.xlane.f32.xlu2 %v1137_v17 }
 0xc21   :  { %v1116_v19 = vpop.f32.mrf.mxu1 }
 0xc22   :  { %v1117_v22 = vadd.f32 %v1116_v19, %v2450_v37  ;;  %v1797_v37 = vpack.i.bf16 %v2691_v47, %v2698_v48 }
 0xc24   :  { %v1140_v23 = vsel %vm485_vm9, %v1117_v22, -inf }
 0xc25   :  { %1141 = vmax.xlane.f32.xlu0 %v1140_v23 }
 0xc29   :  { %v1119_v24 = vpop.f32.mrf.mxu1 }
 0xc2a   :  { %v1120_v27 = vadd.f32 %v1912_v26, %v1119_v24 }
 0xc2c   :  { %v1143_v28 = vsel %vm485_vm9, %v1120_v27, -inf }
 0xc2d   :  { %1144 = vmax.xlane.f32.xlu2 %v1143_v28 }
 0xc2e   :  { %1808 = vrot.lane.b32.xlu1 %v1807_v29, %s1919_s27 }
 0xc31   :  { %v1122_v30 = vpop.f32.mrf.mxu1 }
 0xc32   :  { %v1123_v25 = vadd.f32 %v1913_v32, %v1122_v30 }
 0xc34   :  { %v1146_v33 = vsel %vm485_vm9, %v1123_v25, -inf }
 0xc39   :  { %1798 = vrot.lane.b32.xlu0 %v1797_v37, %s1919_s27 }
 0xc63   :  { %1147 = vmax.xlane.f32.xlu0 %v1146_v33 }
 0xc70   :  { %v1127_v35 = vpop.xlane.xlu1 %1126 }
 0xc71   :  { %v1149_v38 = vsub.f32 %v1102_v2, %v1127_v35 }
 0xc73   :  { %v1157_v63 = vmul.f32 1.442695, %v1149_v38 }
 0xc75   :  { %1863 = vpow2.f32 %v1157_v63 }
 0xc78   :  { %v1130_v39 = vpop.xlane.xlu2 %1129 }
 0xc79   :  { %v1150_v41 = vsub.f32 %v1105_v5, %v1130_v39 }
 0xc7b   :  { %v2774_v42 = vpop.eup %1863  ;;  %v1159_v6 = vmul.f32 1.442695, %v1150_v41 }
 0xc7c   :  { %v1173_v44 = vsel %vm485_vm9, %v2774_v42, 0.0 }
 0xc7d   :  { %1865 = vpow2.f32 %v1159_v6  ;;  %1174 = vadd.xlane.f32.xlu2 %v1173_v44 }
 0xc80   :  { %v1133_v52 = vpop.xlane.xlu0 %1132 }
 0xc81   :  { %v1151_v51 = vsub.f32 %v2746_v9, %v1133_v52 }
 0xc83   :  { %v2778_v45 = vpop.eup %1865  ;;  %v1161_v3 = vmul.f32 1.442695, %v1151_v51 }
 0xc84   :  { %v1176_v46 = vsel %vm485_vm9, %v2778_v45, 0.0 }
 0xc85   :  { %1177 = vadd.xlane.f32.xlu1 %v1176_v46 }
 0xc88   :  { %v1136_v47 = vpop.xlane.xlu1 %1135 }
 0xc89   :  { %v1152_v21 = vsub.f32 %v1111_v13, %v1136_v47 }
 0xc8b   :  { %v1163_v48 = vmul.f32 1.442695, %v1152_v21 }
 0xc8d   :  { %1867 = vpow2.f32 %v1163_v48 }
 0xc90   :  { %v1139_v50 = vpop.xlane.xlu2 %1138 }
 0xc91   :  { %v1153_v53 = vsub.f32 %v1114_v16, %v1139_v50 }
 0xc93   :  { %v2782_v57 = vpop.eup %1867  ;;  %v1165_v18 = vmul.f32 1.442695, %v1153_v53 }
 0xc94   :  { %v1182_v54 = vsel %vm485_vm9, %v2782_v57, 0.0 }
 0xc95   :  { %1869 = vpow2.f32 %v1165_v18  ;;  %1803 = vrot.lane.b32.xlu2 %v1802_v55, %s1919_s27  ;;  %1183 = vadd.xlane.f32.xlu0 %v1182_v54  ;;  %v1734_v18 = vld [vmem:[%s2980_s5 + $0x38] sm:$0xff]  ;;  %v1733_v54 = vld [vmem:[%s2980_s5 + $0x30] sm:$0xff] }
 0xc96   :  { %1355 = vmatpush.msrb.mxu2 %v1734_v18 }
 0xc98   :  { %v1142_v56 = vpop.xlane.xlu0 %1141  ;;  %1356 = vmatpush.msrb.mxu2 %v1733_v54 }
 0xc99   :  { %v1154_v36 = vsub.f32 %v1117_v22, %v1142_v56 }
 0xc9b   :  { %v2789_v60 = vpop.eup %1869  ;;  %v1167_v61 = vmul.f32 1.442695, %v1154_v36 }
 0xc9c   :  { %v1185_v31 = vsel %vm485_vm9, %v2789_v60, 0.0 }
 0xc9d   :  { %1871 = vpow2.f32 %v1167_v61  ;;  %1186 = vadd.xlane.f32.xlu0 %v1185_v31  ;;  %v1732_v31 = vld [vmem:[%s2980_s5 + $0x28] sm:$0xff] }
 0xc9e   :  { %1873 = vpow2.f32 %v1161_v3  ;;  %1357 = vmatpush.msrb.mxu2 %v1732_v31  ;;  %v1420_v31 = vperm.slane %v2671_v40, 2 }
 0xca0   :  { %v1145_v4 = vpop.xlane.xlu2 %1144  ;;  %v1809_v16 = vpop.permute.xlu1 %1808 }
 0xca1   :  { %v1155_v5 = vsub.f32 %v1120_v27, %v1145_v4  ;;  %v1810_v26 = vunpack.i.l.bf16 %v1809_v16  ;;  %v1811_v27 = vunpack.i.h.bf16 %v1809_v16 }
 0xca3   :  { %v2793_v1 = vpop.eup %1871  ;;  %v1169_v7 = vmul.f32 1.442695, %v1155_v5 }
 0xca4   :  { %v1188_v43 = vsel %vm485_vm9, %v2793_v1, 0.0  ;;  %v1874_v34 = vpop.eup %1873 }
 0xca5   :  { %1189 = vadd.xlane.f32.xlu1 %v1188_v43  ;;  %1875 = vpow2.f32 %v1169_v7  ;;  %v1179_v8 = vsel %vm485_vm9, %v1874_v34, 0.0 }
 0xcab   :  { %v1799_v49 = vpop.permute.xlu0 %1798  ;;  %v1876_v10 = vpop.eup %1875 }
 0xcac   :  { %v1800_v2 = vunpack.i.l.bf16 %v1799_v49  ;;  %v1801_v20 = vunpack.i.h.bf16 %v1799_v49  ;;  %v1191_v11 = vsel %vm485_vm9, %v1876_v10, 0.0 }
 0xcae   :  { %1271 = vmatpush.msrb.mxu0 %v1800_v2 }
 0xcb0   :  { %1272 = vmatpush.msrb.mxu0 %v1801_v20 }
 0xcbe   :  { %1180 = vadd.xlane.f32.xlu2 %v1179_v8 }
 0xcc6   :  { %1192 = vadd.xlane.f32.xlu2 %v1191_v11  ;;  %v1368_v11 = vperm.slane %v2671_v40, 1 }
 0xcd6   :  { %v1148_v12 = vpop.xlane.xlu0 %1147 }
 0xcd7   :  { %v1156_v9 = vsub.f32 %v1123_v25, %v1148_v12 }
 0xcd9   :  { %v1171_v13 = vmul.f32 1.442695, %v1156_v9 }
 0xcdb   :  { %1877 = vpow2.f32 %v1171_v13 }
 0xce1   :  { %v1878_v15 = vpop.eup %1877 }
 0xce2   :  { %v1194_v59 = vsel %vm485_vm9, %v1878_v15, 0.0 }
 0xce3   :  { %1195 = vadd.xlane.f32.xlu0 %v1194_v59 }
 0xcf0   :  { %v1175_v62 = vpop.xlane.xlu2 %1174 }
 0xcf1   :  { %1879 = vrcp.f32 %v1175_v62 }
 0xcf7   :  { %v1880_v24 = vpop.eup %1879 }
 0xcf8   :  { %v1804_v17 = vpop.permute.xlu2 %1803  ;;  %v1178_v23 = vpop.xlane.xlu1 %1177  ;;  %v1205_v28 = vmul.f32 %v1880_v24, %v2774_v42 }
 0xcf9   :  { %v1805_v19 = vunpack.i.l.bf16 %v1804_v17  ;;  %v1806_v22 = vunpack.i.h.bf16 %v1804_v17  ;;  %1881 = vrcp.f32 %v1178_v23 }
 0xcfb   :  { %1273 = vmatpush.msrb.mxu0 %v1805_v19 }
 0xcfd   :  { %1274 = vmatpush.msrb.mxu0 %v1806_v22 }
 0xcff   :  { %1275 = vmatpush.msrb.mxu0 %v1810_v26  ;;  %v1882_v29 = vpop.eup %1881 }
 0xd00   :  { %v1206_v37 = vmul.f32 %v1882_v29, %v2778_v45 }
 0xd01   :  { %1276 = vmatpush.msrb.mxu0 %v1811_v27 }
 0xd02   :  { %1723 = vmatmul.msk.f32.vlgmr.msrb.gmra.mxu0 %vm485_vm9, %v1205_v28 }
 0xd08   :  { %v1184_v32 = vpop.xlane.xlu0 %1183 }
 0xd0a   :  { %1724 = vmatmul.msk.f32.gmra.mxu0 %vm485_vm9, %v1206_v37  ;;  %v1740_v37 = vld [vmem:[%s2981_s6 + $0x38] sm:$0xff] }
 0xd0b   :  { %1439 = vmatpush.msrb.mxu3 %v1740_v37 }
 0xd10   :  { %v1187_v35 = vpop.xlane.xlu0 %1186 }
 0xd18   :  { %v1190_v39 = vpop.xlane.xlu1 %1189 }
 0xd31   :  { %v1181_v30 = vpop.xlane.xlu2 %1180 }
 0xd32   :  { %1883 = vrcp.f32 %v1181_v30  ;;  %v1739_v30 = vld [vmem:[%s2981_s6 + $0x30] sm:$0xff] }
 0xd33   :  { %1885 = vrcp.f32 %v1184_v32  ;;  %1440 = vmatpush.msrb.mxu3 %v1739_v30  ;;  %v1738_v32 = vld [vmem:[%s2981_s6 + $0x28] sm:$0xff] }
 0xd34   :  { %1887 = vrcp.f32 %v1187_v35 }
 0xd35   :  { %1889 = vrcp.f32 %v1190_v39  ;;  %1441 = vmatpush.msrb.mxu3 %v1738_v32 }
 0xd38   :  { %v1884_v25 = vpop.eup %1883 }
 0xd39   :  { %v1207_v33 = vmul.f32 %v1884_v25, %v1874_v34  ;;  %v1886_v38 = vpop.eup %1885  ;;  %v1193_v6 = vpop.xlane.xlu2 %1192  ;;  %v1737_v25 = vld [vmem:[%s2981_s6 + $0x20] sm:$0xff] }
 0xd3a   :  { %v1208_v63 = vmul.f32 %v1886_v38, %v2782_v57  ;;  %v1888_v41 = vpop.eup %1887  ;;  %1891 = vrcp.f32 %v1193_v6  ;;  %1442 = vmatpush.msrb.mxu3 %v1737_v25  ;;  %v1746_v25 = vld [vmem:[%s2982_s7 + $0x88] sm:$0xff] }
 0xd3b   :  { %1725 = vmatmul.msk.f32.gmra.mxu0 %vm485_vm9, %v1207_v33  ;;  %v1209_v42 = vmul.f32 %v1888_v41, %v2789_v60  ;;  %v1890_v44 = vpop.eup %1889 }
 0xd3c   :  { %v1210_v45 = vmul.f32 %v1890_v44, %v2793_v1  ;;  %v1731_v1 = vld [vmem:[%s2980_s5 + $0x20] sm:$0xff] }
 0xd3d   :  { %1358 = vmatpush.msrb.mxu2 %v1731_v1  ;;  %v1757_v1 = vld [vmem:[%s2982_s7 + $0xe0] sm:$0xff] }
 0xd40   :  { %v1892_v46 = vpop.eup %1891 }
 0xd41   :  { %v1211_v21 = vmul.f32 %v1892_v46, %v1876_v10 }
 0xd43   :  { %1726 = vmatmul.msk.f32.gmra.mxu0 %vm485_vm9, %v1208_v63 }
 0xd4b   :  { %1727 = vmatmul.msk.f32.gmra.mxu0 %vm485_vm9, %v1209_v42 }
 0xd53   :  { %1728 = vmatmul.msk.f32.gmra.mxu0 %vm485_vm9, %v1210_v45 }
 0xd56   :  { %v1196_v47 = vpop.xlane.xlu0 %1195 }
 0xd57   :  { %1893 = vrcp.f32 %v1196_v47 }
 0xd5b   :  { %1729 = vmatmul.msk.f32.gmra.mxu0 %vm485_vm9, %v1211_v21 }
 0xd5d   :  { %v1894_v48 = vpop.eup %1893 }
 0xd5e   :  { %v1212_v52 = vmul.f32 %v1894_v48, %v1878_v15 }
 0xd63   :  { %1730 = vmatmul.msk.f32.gmra.mxu0 %vm485_vm9, %v1212_v52 }
 0xd7f   :  { %v1278_v50 = vpop.f32.mrf.mxu0 }
 0xd87   :  { %v1281_v53 = vpop.f32.mrf.mxu0 }
 0xdb8   :  { %v1284_v57 = vpop.f32.mrf.mxu0 }
 0xdb9   :  { %1304 = vrot.lane.b32.xlu1 %v1284_v57, %s1920_s15 }
 0xdc0   :  { %v1287_v55 = vpop.f32.mrf.mxu0 }
 0xdc1   :  { %1306 = vrot.lane.b32.xlu1 %v1287_v55, %s1920_s15 }
 0xdc8   :  { %v1290_v56 = vpop.f32.mrf.mxu0 }
 0xdc9   :  { %1312 = vrot.lane.b32.xlu2 %v1290_v56, %s1921_s23 }
 0xdd0   :  { %v1293_v36 = vpop.f32.mrf.mxu0 }
 0xdd8   :  { %v1296_v60 = vpop.f32.mrf.mxu0 }
 0xdd9   :  { %1320 = vrot.lane.b32.xlu0 %v1296_v60, %s1922_s24  ;;  %v1759_v60 = vld [vmem:[%s2982_s7 + $0xf0] sm:$0xff] }
 0xde0   :  { %v1299_v61 = vpop.f32.mrf.mxu0 }
 0xde1   :  { %1314 = vrot.lane.b32.xlu0 %v1293_v36, %s1921_s23  ;;  %1322 = vrot.lane.b32.xlu2 %v1299_v61, %s1922_s24  ;;  %v1760_v36 = vld [vmem:[%s2982_s7 + $0xf8] sm:$0xff]  ;;  %v1758_v61 = vld [vmem:[%s2982_s7 + $0xe8] sm:$0xff] }
 0xde2   :  { %1556 = vmatpush.msra.mxu2 %v1760_v36 }
 0xde4   :  { %1557 = vmatpush.msra.mxu2 %v1759_v60 }
 0xde6   :  { %1558 = vmatpush.msra.mxu2 %v1758_v61 }
 0xde8   :  { %1559 = vmatpush.msra.mxu2 %v1757_v1 }
 0xe23   :  { %v1313_v51 = vpop.permute.xlu2 %1312 }
 0xe2b   :  { %v1305_v43 = vpop.permute.xlu1 %1304 }
 0xe2c   :  { %v1326_v49 = vsel %vm411_vm8, %v1278_v50, %v1305_v43  ;;  %v1756_v43 = vld [vmem:[%s2982_s7 + $0xd8] sm:$0xff] }
 0xe2d   :  { %v1328_v2 = vsel %vm689_vm10, %v1326_v49, %v1313_v51  ;;  %1560 = vmatpush.msra.mxu2 %v1756_v43 }
 0xe33   :  { %v1307_v4 = vpop.permute.xlu1 %1306 }
 0xe34   :  { %v1327_v5 = vsel %vm411_vm8, %v1281_v53, %v1307_v4 }
 0xe3b   :  { %v1323_v34 = vpop.permute.xlu2 %1322 }
 0xe4b   :  { %v1321_v20 = vpop.permute.xlu0 %1320 }
 0xe4c   :  { %v1330_v3 = vsel %vm692_vm11, %v1328_v2, %v1321_v20  ;;  %v1755_v2 = vld [vmem:[%s2982_s7 + $0xd0] sm:$0xff] }
 0xe4d   :  { %1735 = vmatmul.msk.f32.vlgmr.msrb.gmra.mxu2 %vm295_vm0, %v1330_v3  ;;  %v1754_v3 = vld [vmem:[%s2982_s7 + $0xc8] sm:$0xff] }
 0xe4e   :  { %1561 = vmatpush.msra.mxu2 %v1755_v2 }
 0xe50   :  { %1562 = vmatpush.msra.mxu2 %v1754_v3 }
 0xe53   :  { %v1315_v7 = vpop.permute.xlu0 %1314 }
 0xe54   :  { %v1329_v8 = vsel %vm689_vm10, %v1327_v5, %v1315_v7  ;;  %v1753_v5 = vld [vmem:[%s2982_s7 + $0xc0] sm:$0xff] }
 0xe55   :  { %v1331_v10 = vsel %vm692_vm11, %v1329_v8, %v1323_v34  ;;  %1563 = vmatpush.msra.mxu2 %v1753_v5  ;;  %v1752_v34 = vld [vmem:[%s2982_s7 + $0xb8] sm:$0xff] }
 0xe56   :  { %1736 = vmatmul.msk.f32.gmra.mxu2 %vm295_vm0, %v1331_v10 }
 0xe57   :  { %1564 = vmatpush.msra.mxu2 %v1752_v34 }
 0xed0   :  { %v1360_v12 = vpop.f32.mrf.mxu2 }
 0xed1   :  { %v1366_v9 = vadd.f32 %v1360_v12, %v2637_v58  ;;  %v1751_v12 = vld [vmem:[%s2982_s7 + $0xb0] sm:$0xff] }
 0xed2   :  { %1565 = vmatpush.msra.mxu2 %v1751_v12 }
 0xed3   :  { %v2842_v13 = vadd.f32 %v1368_v11, %v1366_v9 }
 0xed5   :  { %v1371_v15 = vsel %vm295_vm0, %v2842_v13, 0.0 }
 0xed6   :  { %1372 = vadd.xlane.f32.xlu1 %v1371_v15 }
 0xed9   :  { %v1363_v59 = vpop.f32.mrf.mxu2 }
 0xeda   :  { %v1367_v62 = vadd.f32 %v1363_v59, %v2642_v0 }
 0xedc   :  { %v2847_v16 = vadd.f32 %v1368_v11, %v1367_v62  ;;  %v1750_v62 = vld [vmem:[%s2982_s7 + $0xa8] sm:$0xff] }
 0xedd   :  { %1566 = vmatpush.msra.mxu2 %v1750_v62 }
 0xede   :  { %v1374_v17 = vsel %vm295_vm0, %v2847_v16, 0.0 }
 0xedf   :  { %1375 = vadd.xlane.f32.xlu0 %v1374_v17 }
 0xf49   :  { %v1373_v19 = vpop.xlane.xlu1 %1372 }
 0xf4a   :  { %v1377_v22 = vmul.f32 %v1373_v19, %v2321_v14 }
 0xf4c   :  { %v1379_v58 = vsub.f32 %v2842_v13, %v1377_v22 }
 0xf4e   :  { %v1381_v23 = vmul.f32 %v1379_v58, %v1379_v58 }
 0xf50   :  { %v1383_v24 = vsel %vm295_vm0, %v1381_v23, 0.0 }
 0xf51   :  { %1384 = vadd.xlane.f32.xlu2 %v1383_v24 }
 0xf52   :  { %v1376_v26 = vpop.xlane.xlu0 %1375 }
 0xf53   :  { %v1378_v27 = vmul.f32 %v1376_v26, %v2321_v14  ;;  %v1748_v26 = vld [vmem:[%s2982_s7 + $0x98] sm:$0xff] }
 0xf55   :  { %v1380_v0 = vsub.f32 %v2847_v16, %v1378_v27 }
 0xf57   :  { %v1382_v28 = vmul.f32 %v1380_v0, %v1380_v0 }
 0xf59   :  { %v1386_v29 = vsel %vm295_vm0, %v1382_v28, 0.0 }
 0xf5a   :  { %1387 = vadd.xlane.f32.xlu1 %v1386_v29  ;;  %v1747_v29 = vld [vmem:[%s2982_s7 + $0x90] sm:$0xff] }
 0xfc4   :  { %v1385_v33 = vpop.xlane.xlu2 %1384 }
 0xfc5   :  { %v1389_v35 = vmul.f32 %v1385_v33, %v2321_v14 }
 0xfc7   :  { %v1391_v38 = vadd.f32 1e-06, %v1389_v35 }
 0xfc9   :  { %1895 = vrsqrt.f32 %v1391_v38  ;;  %vm1399_vm9 = vweird.f32 %v1391_v38 }
 0xfcd   :  { %v1388_v63 = vpop.xlane.xlu1 %1387 }
 0xfce   :  { %v1390_v39 = vmul.f32 %v1388_v63, %v2321_v14 }
 0xfcf   :  { %v1896_v41 = vpop.eup %1895 }
 0xfd0   :  { %v1394_v42 = vmul.f32 %v1896_v41, %v1391_v38  ;;  %v1392_v6 = vadd.f32 1e-06, %v1390_v39  ;;  %vm1400_vm8 = vweird.f32 %v1896_v41  ;;  %v1745_v38 = vld [vmem:[%s2982_s7 + $0x80] sm:$0xff] }
 0xfd1   :  { %vm1401_vm10 = vmor %vm1399_vm9, %vm1400_vm8 }
 0xfd2   :  { %v1395_v44 = vmul.f32 %v1896_v41, %v1394_v42  ;;  %1897 = vrsqrt.f32 %v1392_v6  ;;  %vm1409_vm6 = vweird.f32 %v1392_v6 }
 0xfd4   :  { %v1396_v45 = vmul.f32 0.5, %v1395_v44 }
 0xfd6   :  { %v1397_v46 = vsub.f32 1.5, %v1396_v45 }
 0xfd8   :  { %v1898_v47 = vpop.eup %1897  ;;  %v1398_v21 = vmul.f32 %v1896_v41, %v1397_v46 }
 0xfd9   :  { %v1404_v48 = vmul.f32 %v1898_v47, %v1392_v6  ;;  %vm1410_vm11 = vweird.f32 %v1898_v47 }
 0xfda   :  { %v1402_v52 = vsel %vm1401_vm10, %v1896_v41, %v1398_v21  ;;  %vm1411_vm7 = vmor %vm1409_vm6, %vm1410_vm11 }
 0xfdb   :  { %v1413_v50 = vmul.f32 %v1402_v52, %v1379_v58  ;;  %v1405_v53 = vmul.f32 %v1898_v47, %v1404_v48  ;;  %v1749_v58 = vld [vmem:[%s2982_s7 + $0xa0] sm:$0xff] }
 0xfdc   :  { %1567 = vmatpush.msra.mxu2 %v1749_v58 }
 0xfdd   :  { %v1406_v57 = vmul.f32 0.5, %v1405_v53  ;;  %1741 = vmatmul.msk.f32.vlgmr.msrb.gmra.mxu3 %vm295_vm0, %v1413_v50 }
 0xfde   :  { %1568 = vmatpush.msra.mxu2 %v1748_v26 }
 0xfdf   :  { %v1407_v55 = vsub.f32 1.5, %v1406_v57 }
 0xfe0   :  { %1569 = vmatpush.msra.mxu2 %v1747_v29 }
 0xfe1   :  { %v1408_v18 = vmul.f32 %v1898_v47, %v1407_v55 }
 0xfe2   :  { %1570 = vmatpush.msra.mxu2 %v1746_v25 }
 0xfe3   :  { %v1412_v54 = vsel %vm1411_vm7, %v1898_v47, %v1408_v18 }
 0xfe4   :  { %v1414_v56 = vmul.f32 %v1412_v54, %v1380_v0  ;;  %1571 = vmatpush.msra.mxu2 %v1745_v38 }
 0xfe6   :  { %1742 = vmatmul.msk.f32.gmra.mxu3 %vm295_vm0, %v1414_v56 }
0x1060   :  { %v1444_v49 = vpop.f32.mrf.mxu3 }
0x1061   :  { %v2889_v51 = vadd.f32 %v1444_v49, %v1420_v31 }
0x1063   :  { %v2895_v20 = vmul.f32 0.70710677, %v2889_v51 }
0x1065   :  { %v1454_v4 = vmul.f32 %v2895_v20, %v2895_v20 }
0x1067   :  { %v1455_v7 = vmin.f32 %v1454_v4, 16.0 }
0x1069   :  { %v1456_v8 = vmul.f32 2.1237322e-06, %v1455_v7  ;;  %v1467_v10 = vmul.f32 3.8918573e-05, %v1455_v7  ;;  %v1447_v11 = vpop.f32.mrf.mxu3 }
0x106a   :  { %v2911_v9 = vadd.f32 %v1447_v11, %v1420_v31 }
0x106b   :  { %v1457_v15 = vadd.f32 0.00028619796, %v1456_v8  ;;  %v1468_v59 = vadd.f32 0.001143296, %v1467_v10 }
0x106c   :  { %v2917_v17 = vmul.f32 0.70710677, %v2911_v9 }
0x106d   :  { %v1458_v19 = vmul.f32 %v1457_v15, %v1455_v7  ;;  %v1469_v22 = vmul.f32 %v1468_v59, %v1455_v7 }
0x106e   :  { %v1494_v23 = vmul.f32 %v2917_v17, %v2917_v17 }
0x106f   :  { %v1470_v24 = vadd.f32 0.014752088, %v1469_v22  ;;  %v1459_v27 = vadd.f32 0.0036580483, %v1458_v19 }
0x1070   :  { %v1495_v0 = vmin.f32 %v1494_v23, 16.0 }
0x1071   :  { %v1471_v28 = vmul.f32 %v1470_v24, %v1455_v7  ;;  %v1460_v33 = vmul.f32 %v1459_v27, %v1455_v7  ;;  %v1450_v27 = vmul.f32 0.5, %v2889_v51  ;;  %v1555_v51 = vperm.slane %v2671_v40, 3 }
0x1072   :  { %v1496_v37 = vmul.f32 2.1237322e-06, %v1495_v0  ;;  %v1507_v30 = vmul.f32 3.8918573e-05, %v1495_v0 }
0x1073   :  { %v1472_v32 = vadd.f32 0.112945676, %v1471_v28  ;;  %v1461_v44 = vadd.f32 0.05243302, %v1460_v33 }
0x1074   :  { %v1497_v35 = vadd.f32 0.00028619796, %v1496_v37  ;;  %v1508_v63 = vadd.f32 0.001143296, %v1507_v30 }
0x1075   :  { %v1473_v39 = vmul.f32 %v1472_v32, %v1455_v7  ;;  %v1462_v52 = vmul.f32 %v1461_v44, %v1455_v7 }
0x1076   :  { %v1498_v41 = vmul.f32 %v1497_v35, %v1495_v0  ;;  %v1509_v42 = vmul.f32 %v1508_v63, %v1495_v0  ;;  %v1451_v35 = vmul.f32 0.5, %v2911_v9 }
0x1077   :  { %v1474_v6 = vadd.f32 0.4994258, %v1473_v39  ;;  %v1463_v55 = vadd.f32 0.18741608, %v1462_v52 }
0x1078   :  { %v1510_v45 = vadd.f32 0.014752088, %v1509_v42  ;;  %v1499_v47 = vadd.f32 0.0036580483, %v1498_v41 }
0x1079   :  { %v1475_v46 = vmul.f32 %v1474_v6, %v1455_v7  ;;  %v1464_v60 = vmul.f32 %v1463_v55, %v1455_v7  ;;  %v1627_v55 = vld [vmem:[%s2984_s9 + $0x10] sm:$0xff] }
0x107a   :  { %v1511_v21 = vmul.f32 %v1510_v45, %v1495_v0  ;;  %v1500_v53 = vmul.f32 %v1499_v47, %v1495_v0 }
0x107b   :  { %v1476_v48 = vadd.f32 1.0, %v1475_v46  ;;  %v1465_v2 = vadd.f32 1.1283791, %v1464_v60 }
0x107c   :  { %v1512_v50 = vadd.f32 0.112945676, %v1511_v21  ;;  %v1501_v54 = vadd.f32 0.05243302, %v1500_v53 }
0x107d   :  { %1899 = vrcp.f32 %v1476_v48  ;;  %v1488_v49 = vand.u32 2147483648, %v1476_v48  ;;  %v1486_v4 = vand.u32 2147483647, %v1476_v48  ;;  %vm1482_vm13 = vweird.f32 %v1476_v48 }
0x107e   :  { %v1513_v57 = vmul.f32 %v1512_v50, %v1495_v0  ;;  %v1502_v1 = vmul.f32 %v1501_v54, %v1495_v0  ;;  %v1466_v11 = vmul.f32 %v1465_v2, %v2895_v20  ;;  %v1625_v54 = vld [vmem:[%s2984_s9] sm:$0xff] }
0x107f   :  { %v1489_v8 = vor.u32 1.1754944e-38, %v1488_v49  ;;  %vm1487_vm15 = vcmp.eq.f32.partialorder %v1486_v4, 8.507059e+37 }
0x1080   :  { %v1514_v18 = vadd.f32 0.4994258, %v1513_v57  ;;  %v1503_v5 = vadd.f32 0.18741608, %v1502_v1 }
0x1082   :  { %v1515_v56 = vmul.f32 %v1514_v18, %v1495_v0  ;;  %v1504_v15 = vmul.f32 %v1503_v5, %v1495_v0  ;;  %v1626_v18 = vld [vmem:[%s2984_s9 + $0x8] sm:$0xff] }
0x1083   :  { %v1900_v36 = vpop.eup %1899 }
0x1084   :  { %v1478_v61 = vmul.f32 %v1900_v36, %v1476_v48  ;;  %v1516_v31 = vadd.f32 1.0, %v1515_v56  ;;  %vm1483_vm12 = vweird.f32 %v1900_v36  ;;  %v1505_v23 = vadd.f32 1.1283791, %v1504_v15 }
0x1085   :  { %vm1484_vm14 = vmor %vm1482_vm13, %vm1483_vm12 }
0x1086   :  { %v1479_v43 = vsub.f32 1.0, %v1478_v61  ;;  %1901 = vrcp.f32 %v1516_v31  ;;  %v1528_v58 = vand.u32 2147483648, %v1516_v31  ;;  %v1526_v26 = vand.u32 2147483647, %v1516_v31 }
0x1087   :  { %vm1522_vm2 = vweird.f32 %v1516_v31  ;;  %v1506_v30 = vmul.f32 %v1505_v23, %v2917_v17 }
0x1088   :  { %v1480_v3 = vmul.f32 %v1900_v36, %v1479_v43  ;;  %v1529_v20 = vor.u32 1.1754944e-38, %v1528_v58  ;;  %vm1527_vm4 = vcmp.eq.f32.partialorder %v1526_v26, 8.507059e+37 }
0x108a   :  { %v1481_v34 = vadd.f32 %v1900_v36, %v1480_v3 }
0x108c   :  { %v1902_v10 = vpop.eup %1901  ;;  %v1485_v12 = vsel %vm1484_vm14, %v1900_v36, %v1481_v34 }
0x108d   :  { %v1490_v7 = vsel %vm1487_vm15, %v1489_v8, %v1485_v12  ;;  %v1518_v59 = vmul.f32 %v1902_v10, %v1516_v31  ;;  %vm1523_vm1 = vweird.f32 %v1902_v10 }
0x108e   :  { %v1491_v62 = vmul.f32 %v1490_v7, %v1466_v11  ;;  %vm1524_vm3 = vmor %vm1522_vm2, %vm1523_vm1 }
0x108f   :  { %v1519_v19 = vsub.f32 1.0, %v1518_v59 }
0x1090   :  { %v1743_v22 = vclamps-f32 %v1491_v62, 1.0 }
0x1091   :  { %v1520_v24 = vmul.f32 %v1902_v10, %v1519_v19  ;;  %v1812_v19 = vld [vmem:[%s2983_s10] ss:$0 sm:$0xff] }
0x1092   :  { %v1534_v28 = vadd.f32 1.0, %v1743_v22 }
0x1093   :  { %v1521_v29 = vadd.f32 %v1902_v10, %v1520_v24 }
0x1094   :  { %v1536_v37 = vmul.f32 %v1534_v28, %v1450_v27 }
0x1095   :  { %v1525_v0 = vsel %vm1524_vm3, %v1902_v10, %v1521_v29 }
0x1096   :  { %1572 = vmatmul.f32.vlgmr.msra.gmra.mxu2 %v1536_v37  ;;  %v1530_v32 = vsel %vm1527_vm4, %v1529_v20, %v1525_v0 }
0x1097   :  { %v1531_v25 = vmul.f32 %v1530_v32, %v1506_v30 }
0x1099   :  { %v1744_v33 = vclamps-f32 %v1531_v25, 1.0 }
0x109b   :  { %v1535_v38 = vadd.f32 1.0, %v1744_v33 }
0x109d   :  { %v1537_v63 = vmul.f32 %v1535_v38, %v1451_v35 }
0x109f   :  { %1575 = vmatmul.f32.gmra.mxu2 %v1537_v63 }
0x1119   :  { %v1573_v39 = vpop.f32.mrf.mxu2 }
0x111a   :  { %v1574_v41 = vadd.f32 %v1573_v39, %v1555_v51 }
0x111c   :  { %v1579_v42 = vadd.f32 %v1574_v41, %v2842_v13 }
0x111e   :  { %v1581_v6 = vsel %vm295_vm0, %v1579_v42, 0.0 }
0x111f   :  { %1582 = vadd.xlane.f32.xlu0 %v1581_v6 }
0x1122   :  { %v1576_v17 = vpop.f32.mrf.mxu2 }
0x1123   :  { %v1577_v44 = vadd.f32 %v1576_v17, %v1555_v51 }
0x1125   :  { %v1580_v45 = vadd.f32 %v1577_v44, %v2847_v16  ;;  %v1628_v16 = vld [vmem:[%s2984_s9 + $0x18] sm:$0xff] }
0x1126   :  { %1651 = vmatpush.msra.mxu3 %v1628_v16 }
0x1127   :  { %v1584_v46 = vsel %vm295_vm0, %v1580_v45, 0.0 }
0x1128   :  { %1585 = vadd.xlane.f32.xlu2 %v1584_v46  ;;  %1652 = vmatpush.msra.mxu3 %v1627_v55 }
0x112a   :  { %1653 = vmatpush.msra.mxu3 %v1626_v18 }
0x112c   :  { %1654 = vmatpush.msra.mxu3 %v1625_v54 }
0x1192   :  { %v1583_v9 = vpop.xlane.xlu0 %1582 }
0x1193   :  { %v1587_v47 = vmul.f32 %v1583_v9, %v2321_v14 }
0x1195   :  { %v1589_v21 = vsub.f32 %v1579_v42, %v1587_v47 }
0x1197   :  { %v1591_v48 = vmul.f32 %v1589_v21, %v1589_v21 }
0x1199   :  { %v1593_v40 = vsel %vm295_vm0, %v1591_v48, 0.0 }
0x119a   :  { %1594 = vadd.xlane.f32.xlu1 %v1593_v40 }
0x119b   :  { %v1586_v52 = vpop.xlane.xlu2 %1585 }
0x119c   :  { %v1588_v13 = vmul.f32 %v1586_v52, %v2321_v14 }
0x119e   :  { %v1590_v50 = vsub.f32 %v1580_v45, %v1588_v13 }
0x11a0   :  { %v1592_v53 = vmul.f32 %v1590_v50, %v1590_v50 }
0x11a2   :  { %v1596_v57 = vsel %vm295_vm0, %v1592_v53, 0.0 }
0x11a3   :  { %1597 = vadd.xlane.f32.xlu0 %v1596_v57 }
0x120d   :  { %v1595_v56 = vpop.xlane.xlu1 %1594 }
0x120e   :  { %v1599_v36 = vmul.f32 %v1595_v56, %v2321_v14 }
0x1210   :  { %v1601_v60 = vadd.f32 1e-06, %v1599_v36 }
0x1212   :  { %1903 = vrsqrt.f32 %v1601_v60  ;;  %vm1609_vm8 = vweird.f32 %v1601_v60 }
0x1216   :  { %v1598_v61 = vpop.xlane.xlu0 %1597 }
0x1217   :  { %v1600_v31 = vmul.f32 %v1598_v61, %v2321_v14 }
0x1218   :  { %v1904_v1 = vpop.eup %1903 }
0x1219   :  { %v1604_v43 = vmul.f32 %v1904_v1, %v1601_v60  ;;  %v1602_v49 = vadd.f32 1e-06, %v1600_v31  ;;  %vm1610_vm5 = vweird.f32 %v1904_v1 }
0x121a   :  { %vm1611_vm9 = vmor %vm1609_vm8, %vm1610_vm5 }
0x121b   :  { %v1605_v2 = vmul.f32 %v1904_v1, %v1604_v43  ;;  %1905 = vrsqrt.f32 %v1602_v49  ;;  %vm1619_vm11 = vweird.f32 %v1602_v49 }
0x121d   :  { %v1606_v3 = vmul.f32 0.5, %v1605_v2 }
0x121f   :  { %v1607_v4 = vsub.f32 1.5, %v1606_v3 }
0x1221   :  { %v1906_v5 = vpop.eup %1905  ;;  %v1608_v34 = vmul.f32 %v1904_v1, %v1607_v4 }
0x1222   :  { %v1614_v8 = vmul.f32 %v1906_v5, %v1602_v49  ;;  %vm1620_vm10 = vweird.f32 %v1906_v5 }
0x1223   :  { %v1612_v10 = vsel %vm1611_vm9, %v1904_v1, %v1608_v34  ;;  %vm1621_vm6 = vmor %vm1619_vm11, %vm1620_vm10 }
0x1224   :  { %v1623_v11 = vmul.f32 %v1612_v10, %v1589_v21  ;;  %v1615_v12 = vmul.f32 %v1906_v5, %v1614_v8 }
0x1226   :  { %v1616_v7 = vmul.f32 0.5, %v1615_v12  ;;  %1761 = vmatmul.msk.f32.vlgmr.msra.gmra.mxu3 %vm295_vm0, %v1623_v11 }
0x1228   :  { %v1617_v14 = vsub.f32 1.5, %v1616_v7 }
0x122a   :  { %v1618_v15 = vmul.f32 %v1906_v5, %v1617_v14 }
0x122c   :  { %v1622_v59 = vsel %vm1621_vm6, %v1906_v5, %v1618_v15 }
0x122d   :  { %v1624_v62 = vmul.f32 %v1622_v59, %v1590_v50 }
0x122f   :  { %1762 = vmatmul.msk.f32.gmra.mxu3 %vm295_vm0, %v1624_v62 }
0x12a9   :  { %v1656_v22 = vpop.f32.mrf.mxu3 }
0x12aa   :  { %v1657_v58 = vadd.f32 %v1812_v19, %v1656_v22 }
0x12ac   :  { %1662 = vst [vmem:[%s2985_s11] sm:$0xff] %v1657_v58 }
0x12b2   :  { %v1659_v23 = vpop.f32.mrf.mxu3 }
0x12b3   :  { %v1660_v24 = vadd.f32 %v1812_v19, %v1659_v23 }
0x12b5   :  { %1663 = vst [vmem:[%s2985_s11 + $0x8] sm:$0xff] %v1660_v24 }

</bundles_post_ra>
